<compile_context>
chip_gen: v7x
topology: tpu7x:2x2x1
jax: 0.10.0
libtpu: 0.0.40
codegen_flags: <defaults>
</compile_context>

<pallas_src>
import functools

import numpy as np
import jax
import jax.numpy as jnp
from jax.experimental import pallas as pl
from jax.experimental.pallas import tpu as pltpu


# Fixed module configuration (middle block, i=1 of numHierarchy=3).
FEATURE_SIZE = 4
SCALE_RATIO = 2
INPUT_NC = FEATURE_SIZE * SCALE_RATIO          # 8
C_IN = INPUT_NC // SCALE_RATIO                 # 4  (block input channels)
C_OUT = INPUT_NC // SCALE_RATIO                # 4  (block output channels)
C_PAD = 8                                      # sublane-padded channel count
MEDIUM_LAYERS = []                             # the assumed UnetBlock(medium_layers=[])
IN_EPS = 1e-5                                  # PyTorch InstanceNorm2d default


# ----------------------------------------------------------------------------
# Fused Pallas kernel: whole UnetBlock forward for ONE image, resident in VMEM.
# ----------------------------------------------------------------------------
def _unet_block_kernel(x_ref, w_ref, m_ref, o_ref, *, img_w, n_out):
    # x_ref : (1, C_IN, H*W)   f32   channels on sublanes, flattened spatial on lanes
    # w_ref : (4, 8, 72)       bf16  per-layer folded conv weights (W @ im2col)
    # m_ref : (9, H*W)         f32   0/1 validity mask per 3x3 tap ("same" padding)
    # o_ref : (1, n_out, H*W)  f32   block output
    hw = x_ref.shape[-1]
    c_in = x_ref.shape[1]
    masks = m_ref[...]                                           # (9, hw) f32

    # Pad input channels to a full 8-sublane group (zero rows hit zero weight cols).
    x0 = x_ref[0]                                                # (c_in, hw)
    if c_in < C_PAD:
        a = jnp.concatenate(
            [x0, jnp.zeros((C_PAD - c_in, hw), x0.dtype)], axis=0)
    else:
        a = x0                                                   # (8, hw)

    def conv3x3_in_relu(act, w_bf16):
        """3x3 'same' conv as ONE K=72 MXU matmul, then InstanceNorm + ReLU.

        act: (8, hw) f32, w_bf16: (8, 72) bf16  ->  (8, hw) f32
        """
        # im2col: 9 circularly lane-shifted copies of the activation; wrapped /
        # out-of-image reads are zeroed by the per-tap boundary mask.  Each shift
        # is one static width-hw lane slice of [act | act].
        act2 = jnp.concatenate([act, act], axis=1)               # (8, 2*hw)
        taps = []
        for dy in range(3):
            for dx in range(3):
                off = (dy - 1) * img_w + (dx - 1)                # flat-index shift
                k = off % hw
                sh = act if k == 0 else act2[:, k:k + hw]        # (8, hw)
                t = dy * 3 + dx
                taps.append(sh * masks[t:t + 1, :])              # mask -> exact zeros
        stack = jnp.concatenate(taps, axis=0)                    # (72, hw) f32
        # One big-K matmul on the MXU; bf16 operands, f32 accumulation.
        y = jnp.dot(w_bf16, stack.astype(jnp.bfloat16),
                    preferred_element_type=jnp.float32)          # (8, hw) f32
        # Conv bias intentionally omitted: InstanceNorm's per-(n,c) spatial mean
        # subtraction cancels any per-channel constant exactly.
        # InstanceNorm2d(affine=False): one-pass stats (sum & sum-of-squares ->
        # XLU cross-lane reduces), rsqrt on the EUP, f32 epilogue, then ReLU.
        inv_hw = 1.0 / hw
        mean = jnp.sum(y, axis=1, keepdims=True) * inv_hw        # (8, 1)
        ex2 = jnp.sum(y * y, axis=1, keepdims=True) * inv_hw     # (8, 1)
        var = ex2 - mean * mean
        y = (y - mean) * jax.lax.rsqrt(var + IN_EPS)
        return jnp.maximum(y, 0.0)

    h = a
    for layer in range(4):
        h = conv3x3_in_relu(h, w_ref[layer])                     # (8, hw)

    o_ref[0] = h[:n_out, :]                                      # drop padded rows


# ----------------------------------------------------------------------------
# Wrapper: one fused pallas_call, grid over the batch (parallel axis).
# ----------------------------------------------------------------------------
@jax.jit
def unet_block_forward(x_nchw, wmats, masks):
    """UnetBlock forward.  x_nchw: (N, 4, H, W) f32 -> (N, 4, H, W) f32."""
    n, c, h, w = x_nchw.shape
    hw = h * w
    x_flat = x_nchw.reshape(n, c, hw)        # NCHW is already the internal layout
    kernel = functools.partial(_unet_block_kernel, img_w=w, n_out=C_OUT)
    out = pl.pallas_call(
        kernel,
        out_shape=jax.ShapeDtypeStruct((n, C_OUT, hw), jnp.float32),
        grid=(n,),                            # one image per grid step
        in_specs=[
            pl.BlockSpec((1, c, hw), lambda i: (i, 0, 0)),
            pl.BlockSpec(wmats.shape, lambda i: (0, 0, 0)),
            pl.BlockSpec(masks.shape, lambda i: (0, 0)),
        ],
        out_specs=pl.BlockSpec((1, C_OUT, hw), lambda i: (i, 0, 0)),
        compiler_params=pltpu.CompilerParams(
            dimension_semantics=("parallel",),   # batch axis -> 2nd TC on v7x
        ),
    )(x_flat, wmats, masks)
    return out.reshape(n, C_OUT, h, w)


# ----------------------------------------------------------------------------
# Constant 3x3-tap boundary masks (trace-time numpy, passed as a tiny input).
# ----------------------------------------------------------------------------
def build_tap_masks(h, w):
    """(9, h*w) f32 0/1 masks: tap (dy,dx) valid iff (y+dy-1, x+dx-1) in-bounds."""
    ys, xs = np.divmod(np.arange(h * w), w)
    masks = np.zeros((9, h * w), np.float32)
    for dy in range(3):
        for dx in range(3):
            ok = ((ys + dy - 1 >= 0) & (ys + dy - 1 < h)
                  & (xs + dx - 1 >= 0) & (xs + dx - 1 < w))
            masks[dy * 3 + dx] = ok
    return jnp.asarray(masks)


# ----------------------------------------------------------------------------
# Parameters (PyTorch-native shapes) and kernel weight preparation.
# ----------------------------------------------------------------------------
def _round_bf16(x):
    # Store weights at bf16-representable values so the all-f32 reference and the
    # bf16-matmul kernel share identical weight values (only activation rounding
    # differs).
    return x.astype(jnp.bfloat16).astype(jnp.float32)


def make_params(key):
    """Deterministic parameters of the middle UnetBlock (PyTorch-native layouts)."""
    ks = jax.random.split(key, 8)
    s = 0.1
    rnd = lambda k, shape: _round_bf16(jax.random.normal(k, shape, jnp.float32) * s)
    return {
        # input side: Conv2d, OIHW weights
        "conv1_w": rnd(ks[0], (INPUT_NC, C_IN, 3, 3)),
        "conv1_b": rnd(ks[1], (INPUT_NC,)),
        "conv2_w": rnd(ks[2], (INPUT_NC, INPUT_NC, 3, 3)),
        "conv2_b": rnd(ks[3], (INPUT_NC,)),
        # output side: ConvTranspose2d, IOHW weights
        "convt1_w": rnd(ks[4], (INPUT_NC * SCALE_RATIO, INPUT_NC, 3, 3)),
        "convt1_b": rnd(ks[5], (INPUT_NC,)),
        "convt2_w": rnd(ks[6], (INPUT_NC, C_OUT, 3, 3)),
        "convt2_b": rnd(ks[7], (C_OUT,)),
    }


def _convt_to_conv_oihw(w_iohw):
    # ConvTranspose2d(stride=1, pad=1, k=3) == Conv2d(pad=1) with the kernel
    # spatially flipped and in/out channels swapped.
    return jnp.transpose(jnp.flip(w_iohw, axis=(2, 3)), (1, 0, 2, 3))


def _fold_oihw(w_oihw):
    # (Cout, Cin, 3, 3) -> (Cout, 9*Cin), column index (dy*3+dx)*Cin + ci,
    # matching the im2col stack order built inside the kernel.
    cout = w_oihw.shape[0]
    return jnp.transpose(w_oihw, (0, 2, 3, 1)).reshape(cout, -1)


def prepare_kernel_weights(params):
    """Fold the 4 conv layers into a single (4, 8, 72) bf16 matmul-weight stack."""
    # Layer 1: Conv 4->8; pad Cin 4->8 (matches the zero-padded input channels).
    w1 = jnp.pad(params["conv1_w"], ((0, 0), (0, C_PAD - C_IN), (0, 0), (0, 0)))
    # Layer 2: Conv 8->8.
    w2 = params["conv2_w"]
    # Layer 3: ConvT 16->8 applied to cat([h, h], ch=1).  medium_layers == [] and
    # input_medium_model shares input_model's modules, so both concat halves are
    # identical => conv(cat([h, h]), W) == conv(h, W[:, :8] + W[:, 8:]) exactly.
    assert MEDIUM_LAYERS == [], "concat folding is only valid for medium_layers == []"
    w3_full = _convt_to_conv_oihw(params["convt1_w"])            # (8, 16, 3, 3)
    w3 = w3_full[:, :INPUT_NC] + w3_full[:, INPUT_NC:]           # (8, 8, 3, 3)
    # Layer 4: ConvT 8->4; pad Cout 4->8 (zero rows, sliced off in the kernel).
    w4 = jnp.pad(_convt_to_conv_oihw(params["convt2_w"]),
                 ((0, C_PAD - C_OUT), (0, 0), (0, 0), (0, 0)))   # (8, 8, 3, 3)
    wmats = jnp.stack([_fold_oihw(x) for x in (w1, w2, w3, w4)], axis=0)  # (4,8,72)
    return wmats.astype(jnp.bfloat16)
    # Conv biases are intentionally not used by the kernel: InstanceNorm's mean
    # subtraction cancels them exactly (validated against the biased reference).


# ----------------------------------------------------------------------------
# Pure-JAX reference: direct transcription of the PyTorch forward
# (with biases and the real channel concat), all in f32.
# ----------------------------------------------------------------------------
def _oihw_to_hwio(w):
    return jnp.transpose(w, (2, 3, 1, 0))


def _ref_layer(x_nhwc, w_hwio, b):
    y = jax.lax.conv_general_dilated(
        x_nhwc, w_hwio, window_strides=(1, 1), padding="SAME",
        dimension_numbers=("NHWC", "HWIO", "NHWC")) + b.reshape(1, 1, 1, -1)
    mean = jnp.mean(y, axis=(1, 2), keepdims=True)
    var = jnp.mean((y - mean) ** 2, axis=(1, 2), keepdims=True)
    return jnp.maximum((y - mean) * jax.lax.rsqrt(var + IN_EPS), 0.0)


def unet_block_forward_ref(x_nchw, params):
    x = jnp.transpose(x_nchw, (0, 2, 3, 1))                      # NCHW -> NHWC

    def input_model(t):
        t = _ref_layer(t, _oihw_to_hwio(params["conv1_w"]), params["conv1_b"])
        return _ref_layer(t, _oihw_to_hwio(params["conv2_w"]), params["conv2_b"])

    h_in = input_model(x)
    h_med = input_model(x)        # input_medium_model == input_model + [] medium
    cat = jnp.concatenate([h_in, h_med], axis=-1)                # torch.cat(dim=1)
    wt1 = _oihw_to_hwio(_convt_to_conv_oihw(params["convt1_w"]))
    wt2 = _oihw_to_hwio(_convt_to_conv_oihw(params["convt2_w"]))
    o = _ref_layer(cat, wt1, params["convt1_b"])
    o = _ref_layer(o, wt2, params["convt2_b"])
    return jnp.transpose(o, (0, 3, 1, 2))                        # NHWC -> NCHW


if __name__ == "__main__":
    key = jax.random.PRNGKey(0)
    kx, kp = jax.random.split(key)

    # Block input: (N, C=input_nc//scale_ratio=4, H, W) in PyTorch NCHW convention.
    x = jax.random.normal(kx, (2, C_IN, 16, 16), dtype=jnp.float32)
    params = make_params(kp)
    wmats = prepare_kernel_weights(params)
    masks = build_tap_masks(16, 16)

    out = jax.block_until_ready(unet_block_forward(x, wmats, masks))
    assert out.shape == (2, C_OUT, 16, 16), out.shape

    ref = jax.block_until_ready(unet_block_forward_ref(x, params))
    max_err = float(jnp.max(jnp.abs(out - ref)))
    # bf16 matmul operands (f32 accumulation) vs an all-f32 reference: expect
    # ~1e-2-level deltas.  Real structural bugs (wrong tap offset / mask / weight
    # fold) produce O(1) errors, far above this tolerance.
    assert jnp.allclose(out, ref, rtol=5e-2, atol=5e-2), max_err

    print("KERNEL_OK")
</pallas_src>

<mosaic_0001>
module attributes {stable_mosaic.version = 11 : i64} {
  func.func @_unet_block_kernel(%arg0: i32, %arg1: memref<1x4x256xf32, #tpu.memory_space<vmem>>, %arg2: memref<4x8x72xbf16, #tpu.memory_space<vmem>>, %arg3: memref<9x256xf32, #tpu.memory_space<vmem>>, %arg4: memref<1x4x256xf32, #tpu.memory_space<vmem>>) attributes {dimension_semantics = [#tpu.dimension_semantics<parallel>], iteration_bounds = array<i64: 2>, scalar_prefetch = 0 : i64, scratch_operands = 0 : i64, tpu.core_type = #tpu.core_type<tc>, window_params = [{transform_indices = @transform_0, window_bounds = array<i64: 1, 4, 256>}, {pipeline_mode = #tpu.pipeline_mode<synchronous>, transform_indices = @transform_1, window_bounds = array<i64: 4, 8, 72>}, {pipeline_mode = #tpu.pipeline_mode<synchronous>, transform_indices = @transform_2, window_bounds = array<i64: 9, 256>}, {transform_indices = @transform_3, window_bounds = array<i64: 1, 4, 256>}]} {
    %c0 = arith.constant 0 : index
    %c0_0 = arith.constant 0 : index
    %0 = vector.load %arg3[%c0, %c0_0] : memref<9x256xf32, #tpu.memory_space<vmem>>, vector<9x256xf32>
    %c0_1 = arith.constant 0 : index
    %c0_2 = arith.constant 0 : index
    %c0_3 = arith.constant 0 : index
    %1 = vector.load %arg1[%c0_1, %c0_2, %c0_3] : memref<1x4x256xf32, #tpu.memory_space<vmem>>, vector<1x4x256xf32>
    %2 = vector.shape_cast %1 : vector<1x4x256xf32> to vector<4x256xf32>
    %cst = arith.constant 0.000000e+00 : f32
    %3 = vector.broadcast %cst : f32 to vector<4x256xf32>
    %4 = tpu.concatenate %2, %3 in 0 : vector<4x256xf32>, vector<4x256xf32> -> vector<8x256xf32>
    %c0_4 = arith.constant 0 : index
    %c0_5 = arith.constant 0 : index
    %c0_6 = arith.constant 0 : index
    %5 = vector.load %arg2[%c0_4, %c0_5, %c0_6] : memref<4x8x72xbf16, #tpu.memory_space<vmem>>, vector<1x8x72xbf16>
    %6 = vector.shape_cast %5 : vector<1x8x72xbf16> to vector<8x72xbf16>
    %7 = tpu.concatenate %4, %4 in 1 : vector<8x256xf32>, vector<8x256xf32> -> vector<8x512xf32>
    %8 = vector.extract_strided_slice %7 {offsets = [0, 239], sizes = [8, 256], strides = [1, 1]} : vector<8x512xf32> to vector<8x256xf32>
    %9 = vector.extract_strided_slice %0 {offsets = [0, 0], sizes = [1, 256], strides = [1, 1]} : vector<9x256xf32> to vector<1x256xf32>
    %10 = vector.broadcast %9 : vector<1x256xf32> to vector<8x256xf32>
    %11 = arith.mulf %8, %10 : vector<8x256xf32>
    %12 = vector.extract_strided_slice %7 {offsets = [0, 240], sizes = [8, 256], strides = [1, 1]} : vector<8x512xf32> to vector<8x256xf32>
    %13 = vector.extract_strided_slice %0 {offsets = [1, 0], sizes = [1, 256], strides = [1, 1]} : vector<9x256xf32> to vector<1x256xf32>
    %14 = vector.broadcast %13 : vector<1x256xf32> to vector<8x256xf32>
    %15 = arith.mulf %12, %14 : vector<8x256xf32>
    %16 = vector.extract_strided_slice %7 {offsets = [0, 241], sizes = [8, 256], strides = [1, 1]} : vector<8x512xf32> to vector<8x256xf32>
    %17 = vector.extract_strided_slice %0 {offsets = [2, 0], sizes = [1, 256], strides = [1, 1]} : vector<9x256xf32> to vector<1x256xf32>
    %18 = vector.broadcast %17 : vector<1x256xf32> to vector<8x256xf32>
    %19 = arith.mulf %16, %18 : vector<8x256xf32>
    %20 = vector.extract_strided_slice %7 {offsets = [0, 255], sizes = [8, 256], strides = [1, 1]} : vector<8x512xf32> to vector<8x256xf32>
    %21 = vector.extract_strided_slice %0 {offsets = [3, 0], sizes = [1, 256], strides = [1, 1]} : vector<9x256xf32> to vector<1x256xf32>
    %22 = vector.broadcast %21 : vector<1x256xf32> to vector<8x256xf32>
    %23 = arith.mulf %20, %22 : vector<8x256xf32>
    %24 = vector.extract_strided_slice %0 {offsets = [4, 0], sizes = [1, 256], strides = [1, 1]} : vector<9x256xf32> to vector<1x256xf32>
    %25 = vector.broadcast %24 : vector<1x256xf32> to vector<8x256xf32>
    %26 = arith.mulf %4, %25 : vector<8x256xf32>
    %27 = vector.extract_strided_slice %7 {offsets = [0, 1], sizes = [8, 256], strides = [1, 1]} : vector<8x512xf32> to vector<8x256xf32>
    %28 = vector.extract_strided_slice %0 {offsets = [5, 0], sizes = [1, 256], strides = [1, 1]} : vector<9x256xf32> to vector<1x256xf32>
    %29 = vector.broadcast %28 : vector<1x256xf32> to vector<8x256xf32>
    %30 = arith.mulf %27, %29 : vector<8x256xf32>
    %31 = vector.extract_strided_slice %7 {offsets = [0, 15], sizes = [8, 256], strides = [1, 1]} : vector<8x512xf32> to vector<8x256xf32>
    %32 = vector.extract_strided_slice %0 {offsets = [6, 0], sizes = [1, 256], strides = [1, 1]} : vector<9x256xf32> to vector<1x256xf32>
    %33 = vector.broadcast %32 : vector<1x256xf32> to vector<8x256xf32>
    %34 = arith.mulf %31, %33 : vector<8x256xf32>
    %35 = vector.extract_strided_slice %7 {offsets = [0, 16], sizes = [8, 256], strides = [1, 1]} : vector<8x512xf32> to vector<8x256xf32>
    %36 = vector.extract_strided_slice %0 {offsets = [7, 0], sizes = [1, 256], strides = [1, 1]} : vector<9x256xf32> to vector<1x256xf32>
    %37 = vector.broadcast %36 : vector<1x256xf32> to vector<8x256xf32>
    %38 = arith.mulf %35, %37 : vector<8x256xf32>
    %39 = vector.extract_strided_slice %7 {offsets = [0, 17], sizes = [8, 256], strides = [1, 1]} : vector<8x512xf32> to vector<8x256xf32>
    %40 = vector.extract_strided_slice %0 {offsets = [8, 0], sizes = [1, 256], strides = [1, 1]} : vector<9x256xf32> to vector<1x256xf32>
    %41 = vector.broadcast %40 : vector<1x256xf32> to vector<8x256xf32>
    %42 = arith.mulf %39, %41 : vector<8x256xf32>
    %43 = tpu.concatenate %11, %15, %19, %23, %26, %30, %34, %38, %42 in 0 : vector<8x256xf32>, vector<8x256xf32>, vector<8x256xf32>, vector<8x256xf32>, vector<8x256xf32>, vector<8x256xf32>, vector<8x256xf32>, vector<8x256xf32>, vector<8x256xf32> -> vector<72x256xf32>
    %44 = arith.truncf %43 : vector<72x256xf32> to vector<72x256xbf16>
    %cst_7 = arith.constant dense<0.000000e+00> : vector<8x256xf32>
    %45 = tpu.matmul %6, %44, %cst_7 {dimension_numbers = #tpu.dot_dimension_numbers<[1], [0], [0], [1], [0, 0, 1, 1], [], []>} : vector<8x72xbf16>, vector<72x256xbf16>, vector<8x256xf32> -> vector<8x256xf32>
    %cst_8 = arith.constant dense<0.000000e+00> : vector<8xf32>
    %46 = vector.multi_reduction <add>, %45, %cst_8 [1] : vector<8x256xf32> to vector<8xf32>
    %47 = vector.shape_cast %46 : vector<8xf32> to vector<8x1xf32>
    %cst_9 = arith.constant 3.906250e-03 : f32
    %48 = vector.broadcast %cst_9 : f32 to vector<8x1xf32>
    %49 = arith.mulf %47, %48 : vector<8x1xf32>
    %50 = arith.mulf %45, %45 : vector<8x256xf32>
    %cst_10 = arith.constant dense<0.000000e+00> : vector<8xf32>
    %51 = vector.multi_reduction <add>, %50, %cst_10 [1] : vector<8x256xf32> to vector<8xf32>
    %52 = vector.shape_cast %51 : vector<8xf32> to vector<8x1xf32>
    %cst_11 = arith.constant 3.906250e-03 : f32
    %53 = vector.broadcast %cst_11 : f32 to vector<8x1xf32>
    %54 = arith.mulf %52, %53 : vector<8x1xf32>
    %55 = arith.mulf %49, %49 : vector<8x1xf32>
    %56 = arith.subf %54, %55 : vector<8x1xf32>
    %57 = vector.broadcast %49 : vector<8x1xf32> to vector<8x256xf32>
    %58 = arith.subf %45, %57 : vector<8x256xf32>
    %cst_12 = arith.constant 9.99999974E-6 : f32
    %59 = vector.broadcast %cst_12 : f32 to vector<8x1xf32>
    %60 = arith.addf %56, %59 : vector<8x1xf32>
    %61 = math.rsqrt %60 : vector<8x1xf32>
    %62 = vector.broadcast %61 : vector<8x1xf32> to vector<8x256xf32>
    %63 = arith.mulf %58, %62 : vector<8x256xf32>
    %cst_13 = arith.constant 0.000000e+00 : f32
    %64 = vector.broadcast %cst_13 : f32 to vector<8x256xf32>
    %65 = arith.maximumf %63, %64 : vector<8x256xf32>
    %c1 = arith.constant 1 : index
    %c0_14 = arith.constant 0 : index
    %c0_15 = arith.constant 0 : index
    %66 = vector.load %arg2[%c1, %c0_14, %c0_15] : memref<4x8x72xbf16, #tpu.memory_space<vmem>>, vector<1x8x72xbf16>
    %67 = vector.shape_cast %66 : vector<1x8x72xbf16> to vector<8x72xbf16>
    %68 = tpu.concatenate %65, %65 in 1 : vector<8x256xf32>, vector<8x256xf32> -> vector<8x512xf32>
    %69 = vector.extract_strided_slice %68 {offsets = [0, 239], sizes = [8, 256], strides = [1, 1]} : vector<8x512xf32> to vector<8x256xf32>
    %70 = vector.extract_strided_slice %0 {offsets = [0, 0], sizes = [1, 256], strides = [1, 1]} : vector<9x256xf32> to vector<1x256xf32>
    %71 = vector.broadcast %70 : vector<1x256xf32> to vector<8x256xf32>
    %72 = arith.mulf %69, %71 : vector<8x256xf32>
    %73 = vector.extract_strided_slice %68 {offsets = [0, 240], sizes = [8, 256], strides = [1, 1]} : vector<8x512xf32> to vector<8x256xf32>
    %74 = vector.extract_strided_slice %0 {offsets = [1, 0], sizes = [1, 256], strides = [1, 1]} : vector<9x256xf32> to vector<1x256xf32>
    %75 = vector.broadcast %74 : vector<1x256xf32> to vector<8x256xf32>
    %76 = arith.mulf %73, %75 : vector<8x256xf32>
    %77 = vector.extract_strided_slice %68 {offsets = [0, 241], sizes = [8, 256], strides = [1, 1]} : vector<8x512xf32> to vector<8x256xf32>
    %78 = vector.extract_strided_slice %0 {offsets = [2, 0], sizes = [1, 256], strides = [1, 1]} : vector<9x256xf32> to vector<1x256xf32>
    %79 = vector.broadcast %78 : vector<1x256xf32> to vector<8x256xf32>
    %80 = arith.mulf %77, %79 : vector<8x256xf32>
    %81 = vector.extract_strided_slice %68 {offsets = [0, 255], sizes = [8, 256], strides = [1, 1]} : vector<8x512xf32> to vector<8x256xf32>
    %82 = vector.extract_strided_slice %0 {offsets = [3, 0], sizes = [1, 256], strides = [1, 1]} : vector<9x256xf32> to vector<1x256xf32>
    %83 = vector.broadcast %82 : vector<1x256xf32> to vector<8x256xf32>
    %84 = arith.mulf %81, %83 : vector<8x256xf32>
    %85 = vector.extract_strided_slice %0 {offsets = [4, 0], sizes = [1, 256], strides = [1, 1]} : vector<9x256xf32> to vector<1x256xf32>
    %86 = vector.broadcast %85 : vector<1x256xf32> to vector<8x256xf32>
    %87 = arith.mulf %65, %86 : vector<8x256xf32>
    %88 = vector.extract_strided_slice %68 {offsets = [0, 1], sizes = [8, 256], strides = [1, 1]} : vector<8x512xf32> to vector<8x256xf32>
    %89 = vector.extract_strided_slice %0 {offsets = [5, 0], sizes = [1, 256], strides = [1, 1]} : vector<9x256xf32> to vector<1x256xf32>
    %90 = vector.broadcast %89 : vector<1x256xf32> to vector<8x256xf32>
    %91 = arith.mulf %88, %90 : vector<8x256xf32>
    %92 = vector.extract_strided_slice %68 {offsets = [0, 15], sizes = [8, 256], strides = [1, 1]} : vector<8x512xf32> to vector<8x256xf32>
    %93 = vector.extract_strided_slice %0 {offsets = [6, 0], sizes = [1, 256], strides = [1, 1]} : vector<9x256xf32> to vector<1x256xf32>
    %94 = vector.broadcast %93 : vector<1x256xf32> to vector<8x256xf32>
    %95 = arith.mulf %92, %94 : vector<8x256xf32>
    %96 = vector.extract_strided_slice %68 {offsets = [0, 16], sizes = [8, 256], strides = [1, 1]} : vector<8x512xf32> to vector<8x256xf32>
    %97 = vector.extract_strided_slice %0 {offsets = [7, 0], sizes = [1, 256], strides = [1, 1]} : vector<9x256xf32> to vector<1x256xf32>
    %98 = vector.broadcast %97 : vector<1x256xf32> to vector<8x256xf32>
    %99 = arith.mulf %96, %98 : vector<8x256xf32>
    %100 = vector.extract_strided_slice %68 {offsets = [0, 17], sizes = [8, 256], strides = [1, 1]} : vector<8x512xf32> to vector<8x256xf32>
    %101 = vector.extract_strided_slice %0 {offsets = [8, 0], sizes = [1, 256], strides = [1, 1]} : vector<9x256xf32> to vector<1x256xf32>
    %102 = vector.broadcast %101 : vector<1x256xf32> to vector<8x256xf32>
    %103 = arith.mulf %100, %102 : vector<8x256xf32>
    %104 = tpu.concatenate %72, %76, %80, %84, %87, %91, %95, %99, %103 in 0 : vector<8x256xf32>, vector<8x256xf32>, vector<8x256xf32>, vector<8x256xf32>, vector<8x256xf32>, vector<8x256xf32>, vector<8x256xf32>, vector<8x256xf32>, vector<8x256xf32> -> vector<72x256xf32>
    %105 = arith.truncf %104 : vector<72x256xf32> to vector<72x256xbf16>
    %cst_16 = arith.constant dense<0.000000e+00> : vector<8x256xf32>
    %106 = tpu.matmul %67, %105, %cst_16 {dimension_numbers = #tpu.dot_dimension_numbers<[1], [0], [0], [1], [0, 0, 1, 1], [], []>} : vector<8x72xbf16>, vector<72x256xbf16>, vector<8x256xf32> -> vector<8x256xf32>
    %cst_17 = arith.constant dense<0.000000e+00> : vector<8xf32>
    %107 = vector.multi_reduction <add>, %106, %cst_17 [1] : vector<8x256xf32> to vector<8xf32>
    %108 = vector.shape_cast %107 : vector<8xf32> to vector<8x1xf32>
    %cst_18 = arith.constant 3.906250e-03 : f32
    %109 = vector.broadcast %cst_18 : f32 to vector<8x1xf32>
    %110 = arith.mulf %108, %109 : vector<8x1xf32>
    %111 = arith.mulf %106, %106 : vector<8x256xf32>
    %cst_19 = arith.constant dense<0.000000e+00> : vector<8xf32>
    %112 = vector.multi_reduction <add>, %111, %cst_19 [1] : vector<8x256xf32> to vector<8xf32>
    %113 = vector.shape_cast %112 : vector<8xf32> to vector<8x1xf32>
    %cst_20 = arith.constant 3.906250e-03 : f32
    %114 = vector.broadcast %cst_20 : f32 to vector<8x1xf32>
    %115 = arith.mulf %113, %114 : vector<8x1xf32>
    %116 = arith.mulf %110, %110 : vector<8x1xf32>
    %117 = arith.subf %115, %116 : vector<8x1xf32>
    %118 = vector.broadcast %110 : vector<8x1xf32> to vector<8x256xf32>
    %119 = arith.subf %106, %118 : vector<8x256xf32>
    %cst_21 = arith.constant 9.99999974E-6 : f32
    %120 = vector.broadcast %cst_21 : f32 to vector<8x1xf32>
    %121 = arith.addf %117, %120 : vector<8x1xf32>
    %122 = math.rsqrt %121 : vector<8x1xf32>
    %123 = vector.broadcast %122 : vector<8x1xf32> to vector<8x256xf32>
    %124 = arith.mulf %119, %123 : vector<8x256xf32>
    %cst_22 = arith.constant 0.000000e+00 : f32
    %125 = vector.broadcast %cst_22 : f32 to vector<8x256xf32>
    %126 = arith.maximumf %124, %125 : vector<8x256xf32>
    %c2 = arith.constant 2 : index
    %c0_23 = arith.constant 0 : index
    %c0_24 = arith.constant 0 : index
    %127 = vector.load %arg2[%c2, %c0_23, %c0_24] : memref<4x8x72xbf16, #tpu.memory_space<vmem>>, vector<1x8x72xbf16>
    %128 = vector.shape_cast %127 : vector<1x8x72xbf16> to vector<8x72xbf16>
    %129 = tpu.concatenate %126, %126 in 1 : vector<8x256xf32>, vector<8x256xf32> -> vector<8x512xf32>
    %130 = vector.extract_strided_slice %129 {offsets = [0, 239], sizes = [8, 256], strides = [1, 1]} : vector<8x512xf32> to vector<8x256xf32>
    %131 = vector.extract_strided_slice %0 {offsets = [0, 0], sizes = [1, 256], strides = [1, 1]} : vector<9x256xf32> to vector<1x256xf32>
    %132 = vector.broadcast %131 : vector<1x256xf32> to vector<8x256xf32>
    %133 = arith.mulf %130, %132 : vector<8x256xf32>
    %134 = vector.extract_strided_slice %129 {offsets = [0, 240], sizes = [8, 256], strides = [1, 1]} : vector<8x512xf32> to vector<8x256xf32>
    %135 = vector.extract_strided_slice %0 {offsets = [1, 0], sizes = [1, 256], strides = [1, 1]} : vector<9x256xf32> to vector<1x256xf32>
    %136 = vector.broadcast %135 : vector<1x256xf32> to vector<8x256xf32>
    %137 = arith.mulf %134, %136 : vector<8x256xf32>
    %138 = vector.extract_strided_slice %129 {offsets = [0, 241], sizes = [8, 256], strides = [1, 1]} : vector<8x512xf32> to vector<8x256xf32>
    %139 = vector.extract_strided_slice %0 {offsets = [2, 0], sizes = [1, 256], strides = [1, 1]} : vector<9x256xf32> to vector<1x256xf32>
    %140 = vector.broadcast %139 : vector<1x256xf32> to vector<8x256xf32>
    %141 = arith.mulf %138, %140 : vector<8x256xf32>
    %142 = vector.extract_strided_slice %129 {offsets = [0, 255], sizes = [8, 256], strides = [1, 1]} : vector<8x512xf32> to vector<8x256xf32>
    %143 = vector.extract_strided_slice %0 {offsets = [3, 0], sizes = [1, 256], strides = [1, 1]} : vector<9x256xf32> to vector<1x256xf32>
    %144 = vector.broadcast %143 : vector<1x256xf32> to vector<8x256xf32>
    %145 = arith.mulf %142, %144 : vector<8x256xf32>
    %146 = vector.extract_strided_slice %0 {offsets = [4, 0], sizes = [1, 256], strides = [1, 1]} : vector<9x256xf32> to vector<1x256xf32>
    %147 = vector.broadcast %146 : vector<1x256xf32> to vector<8x256xf32>
    %148 = arith.mulf %126, %147 : vector<8x256xf32>
    %149 = vector.extract_strided_slice %129 {offsets = [0, 1], sizes = [8, 256], strides = [1, 1]} : vector<8x512xf32> to vector<8x256xf32>
    %150 = vector.extract_strided_slice %0 {offsets = [5, 0], sizes = [1, 256], strides = [1, 1]} : vector<9x256xf32> to vector<1x256xf32>
    %151 = vector.broadcast %150 : vector<1x256xf32> to vector<8x256xf32>
    %152 = arith.mulf %149, %151 : vector<8x256xf32>
    %153 = vector.extract_strided_slice %129 {offsets = [0, 15], sizes = [8, 256], strides = [1, 1]} : vector<8x512xf32> to vector<8x256xf32>
    %154 = vector.extract_strided_slice %0 {offsets = [6, 0], sizes = [1, 256], strides = [1, 1]} : vector<9x256xf32> to vector<1x256xf32>
    %155 = vector.broadcast %154 : vector<1x256xf32> to vector<8x256xf32>
    %156 = arith.mulf %153, %155 : vector<8x256xf32>
    %157 = vector.extract_strided_slice %129 {offsets = [0, 16], sizes = [8, 256], strides = [1, 1]} : vector<8x512xf32> to vector<8x256xf32>
    %158 = vector.extract_strided_slice %0 {offsets = [7, 0], sizes = [1, 256], strides = [1, 1]} : vector<9x256xf32> to vector<1x256xf32>
    %159 = vector.broadcast %158 : vector<1x256xf32> to vector<8x256xf32>
    %160 = arith.mulf %157, %159 : vector<8x256xf32>
    %161 = vector.extract_strided_slice %129 {offsets = [0, 17], sizes = [8, 256], strides = [1, 1]} : vector<8x512xf32> to vector<8x256xf32>
    %162 = vector.extract_strided_slice %0 {offsets = [8, 0], sizes = [1, 256], strides = [1, 1]} : vector<9x256xf32> to vector<1x256xf32>
    %163 = vector.broadcast %162 : vector<1x256xf32> to vector<8x256xf32>
    %164 = arith.mulf %161, %163 : vector<8x256xf32>
    %165 = tpu.concatenate %133, %137, %141, %145, %148, %152, %156, %160, %164 in 0 : vector<8x256xf32>, vector<8x256xf32>, vector<8x256xf32>, vector<8x256xf32>, vector<8x256xf32>, vector<8x256xf32>, vector<8x256xf32>, vector<8x256xf32>, vector<8x256xf32> -> vector<72x256xf32>
    %166 = arith.truncf %165 : vector<72x256xf32> to vector<72x256xbf16>
    %cst_25 = arith.constant dense<0.000000e+00> : vector<8x256xf32>
    %167 = tpu.matmul %128, %166, %cst_25 {dimension_numbers = #tpu.dot_dimension_numbers<[1], [0], [0], [1], [0, 0, 1, 1], [], []>} : vector<8x72xbf16>, vector<72x256xbf16>, vector<8x256xf32> -> vector<8x256xf32>
    %cst_26 = arith.constant dense<0.000000e+00> : vector<8xf32>
    %168 = vector.multi_reduction <add>, %167, %cst_26 [1] : vector<8x256xf32> to vector<8xf32>
    %169 = vector.shape_cast %168 : vector<8xf32> to vector<8x1xf32>
    %cst_27 = arith.constant 3.906250e-03 : f32
    %170 = vector.broadcast %cst_27 : f32 to vector<8x1xf32>
    %171 = arith.mulf %169, %170 : vector<8x1xf32>
    %172 = arith.mulf %167, %167 : vector<8x256xf32>
    %cst_28 = arith.constant dense<0.000000e+00> : vector<8xf32>
    %173 = vector.multi_reduction <add>, %172, %cst_28 [1] : vector<8x256xf32> to vector<8xf32>
    %174 = vector.shape_cast %173 : vector<8xf32> to vector<8x1xf32>
    %cst_29 = arith.constant 3.906250e-03 : f32
    %175 = vector.broadcast %cst_29 : f32 to vector<8x1xf32>
    %176 = arith.mulf %174, %175 : vector<8x1xf32>
    %177 = arith.mulf %171, %171 : vector<8x1xf32>
    %178 = arith.subf %176, %177 : vector<8x1xf32>
    %179 = vector.broadcast %171 : vector<8x1xf32> to vector<8x256xf32>
    %180 = arith.subf %167, %179 : vector<8x256xf32>
    %cst_30 = arith.constant 9.99999974E-6 : f32
    %181 = vector.broadcast %cst_30 : f32 to vector<8x1xf32>
    %182 = arith.addf %178, %181 : vector<8x1xf32>
    %183 = math.rsqrt %182 : vector<8x1xf32>
    %184 = vector.broadcast %183 : vector<8x1xf32> to vector<8x256xf32>
    %185 = arith.mulf %180, %184 : vector<8x256xf32>
    %cst_31 = arith.constant 0.000000e+00 : f32
    %186 = vector.broadcast %cst_31 : f32 to vector<8x256xf32>
    %187 = arith.maximumf %185, %186 : vector<8x256xf32>
    %c3 = arith.constant 3 : index
    %c0_32 = arith.constant 0 : index
    %c0_33 = arith.constant 0 : index
    %188 = vector.load %arg2[%c3, %c0_32, %c0_33] : memref<4x8x72xbf16, #tpu.memory_space<vmem>>, vector<1x8x72xbf16>
    %189 = vector.shape_cast %188 : vector<1x8x72xbf16> to vector<8x72xbf16>
    %190 = tpu.concatenate %187, %187 in 1 : vector<8x256xf32>, vector<8x256xf32> -> vector<8x512xf32>
    %191 = vector.extract_strided_slice %190 {offsets = [0, 239], sizes = [8, 256], strides = [1, 1]} : vector<8x512xf32> to vector<8x256xf32>
    %192 = vector.extract_strided_slice %0 {offsets = [0, 0], sizes = [1, 256], strides = [1, 1]} : vector<9x256xf32> to vector<1x256xf32>
    %193 = vector.broadcast %192 : vector<1x256xf32> to vector<8x256xf32>
    %194 = arith.mulf %191, %193 : vector<8x256xf32>
    %195 = vector.extract_strided_slice %190 {offsets = [0, 240], sizes = [8, 256], strides = [1, 1]} : vector<8x512xf32> to vector<8x256xf32>
    %196 = vector.extract_strided_slice %0 {offsets = [1, 0], sizes = [1, 256], strides = [1, 1]} : vector<9x256xf32> to vector<1x256xf32>
    %197 = vector.broadcast %196 : vector<1x256xf32> to vector<8x256xf32>
    %198 = arith.mulf %195, %197 : vector<8x256xf32>
    %199 = vector.extract_strided_slice %190 {offsets = [0, 241], sizes = [8, 256], strides = [1, 1]} : vector<8x512xf32> to vector<8x256xf32>
    %200 = vector.extract_strided_slice %0 {offsets = [2, 0], sizes = [1, 256], strides = [1, 1]} : vector<9x256xf32> to vector<1x256xf32>
    %201 = vector.broadcast %200 : vector<1x256xf32> to vector<8x256xf32>
    %202 = arith.mulf %199, %201 : vector<8x256xf32>
    %203 = vector.extract_strided_slice %190 {offsets = [0, 255], sizes = [8, 256], strides = [1, 1]} : vector<8x512xf32> to vector<8x256xf32>
    %204 = vector.extract_strided_slice %0 {offsets = [3, 0], sizes = [1, 256], strides = [1, 1]} : vector<9x256xf32> to vector<1x256xf32>
    %205 = vector.broadcast %204 : vector<1x256xf32> to vector<8x256xf32>
    %206 = arith.mulf %203, %205 : vector<8x256xf32>
    %207 = vector.extract_strided_slice %0 {offsets = [4, 0], sizes = [1, 256], strides = [1, 1]} : vector<9x256xf32> to vector<1x256xf32>
    %208 = vector.broadcast %207 : vector<1x256xf32> to vector<8x256xf32>
    %209 = arith.mulf %187, %208 : vector<8x256xf32>
    %210 = vector.extract_strided_slice %190 {offsets = [0, 1], sizes = [8, 256], strides = [1, 1]} : vector<8x512xf32> to vector<8x256xf32>
    %211 = vector.extract_strided_slice %0 {offsets = [5, 0], sizes = [1, 256], strides = [1, 1]} : vector<9x256xf32> to vector<1x256xf32>
    %212 = vector.broadcast %211 : vector<1x256xf32> to vector<8x256xf32>
    %213 = arith.mulf %210, %212 : vector<8x256xf32>
    %214 = vector.extract_strided_slice %190 {offsets = [0, 15], sizes = [8, 256], strides = [1, 1]} : vector<8x512xf32> to vector<8x256xf32>
    %215 = vector.extract_strided_slice %0 {offsets = [6, 0], sizes = [1, 256], strides = [1, 1]} : vector<9x256xf32> to vector<1x256xf32>
    %216 = vector.broadcast %215 : vector<1x256xf32> to vector<8x256xf32>
    %217 = arith.mulf %214, %216 : vector<8x256xf32>
    %218 = vector.extract_strided_slice %190 {offsets = [0, 16], sizes = [8, 256], strides = [1, 1]} : vector<8x512xf32> to vector<8x256xf32>
    %219 = vector.extract_strided_slice %0 {offsets = [7, 0], sizes = [1, 256], strides = [1, 1]} : vector<9x256xf32> to vector<1x256xf32>
    %220 = vector.broadcast %219 : vector<1x256xf32> to vector<8x256xf32>
    %221 = arith.mulf %218, %220 : vector<8x256xf32>
    %222 = vector.extract_strided_slice %190 {offsets = [0, 17], sizes = [8, 256], strides = [1, 1]} : vector<8x512xf32> to vector<8x256xf32>
    %223 = vector.extract_strided_slice %0 {offsets = [8, 0], sizes = [1, 256], strides = [1, 1]} : vector<9x256xf32> to vector<1x256xf32>
    %224 = vector.broadcast %223 : vector<1x256xf32> to vector<8x256xf32>
    %225 = arith.mulf %222, %224 : vector<8x256xf32>
    %226 = tpu.concatenate %194, %198, %202, %206, %209, %213, %217, %221, %225 in 0 : vector<8x256xf32>, vector<8x256xf32>, vector<8x256xf32>, vector<8x256xf32>, vector<8x256xf32>, vector<8x256xf32>, vector<8x256xf32>, vector<8x256xf32>, vector<8x256xf32> -> vector<72x256xf32>
    %227 = arith.truncf %226 : vector<72x256xf32> to vector<72x256xbf16>
    %cst_34 = arith.constant dense<0.000000e+00> : vector<8x256xf32>
    %228 = tpu.matmul %189, %227, %cst_34 {dimension_numbers = #tpu.dot_dimension_numbers<[1], [0], [0], [1], [0, 0, 1, 1], [], []>} : vector<8x72xbf16>, vector<72x256xbf16>, vector<8x256xf32> -> vector<8x256xf32>
    %cst_35 = arith.constant dense<0.000000e+00> : vector<8xf32>
    %229 = vector.multi_reduction <add>, %228, %cst_35 [1] : vector<8x256xf32> to vector<8xf32>
    %230 = vector.shape_cast %229 : vector<8xf32> to vector<8x1xf32>
    %cst_36 = arith.constant 3.906250e-03 : f32
    %231 = vector.broadcast %cst_36 : f32 to vector<8x1xf32>
    %232 = arith.mulf %230, %231 : vector<8x1xf32>
    %233 = arith.mulf %228, %228 : vector<8x256xf32>
    %cst_37 = arith.constant dense<0.000000e+00> : vector<8xf32>
    %234 = vector.multi_reduction <add>, %233, %cst_37 [1] : vector<8x256xf32> to vector<8xf32>
    %235 = vector.shape_cast %234 : vector<8xf32> to vector<8x1xf32>
    %cst_38 = arith.constant 3.906250e-03 : f32
    %236 = vector.broadcast %cst_38 : f32 to vector<8x1xf32>
    %237 = arith.mulf %235, %236 : vector<8x1xf32>
    %238 = arith.mulf %232, %232 : vector<8x1xf32>
    %239 = arith.subf %237, %238 : vector<8x1xf32>
    %240 = vector.broadcast %232 : vector<8x1xf32> to vector<8x256xf32>
    %241 = arith.subf %228, %240 : vector<8x256xf32>
    %cst_39 = arith.constant 9.99999974E-6 : f32
    %242 = vector.broadcast %cst_39 : f32 to vector<8x1xf32>
    %243 = arith.addf %239, %242 : vector<8x1xf32>
    %244 = math.rsqrt %243 : vector<8x1xf32>
    %245 = vector.broadcast %244 : vector<8x1xf32> to vector<8x256xf32>
    %246 = arith.mulf %241, %245 : vector<8x256xf32>
    %cst_40 = arith.constant 0.000000e+00 : f32
    %247 = vector.broadcast %cst_40 : f32 to vector<8x256xf32>
    %248 = arith.maximumf %246, %247 : vector<8x256xf32>
    %249 = vector.extract_strided_slice %248 {offsets = [0, 0], sizes = [4, 256], strides = [1, 1]} : vector<8x256xf32> to vector<4x256xf32>
    %c0_41 = arith.constant 0 : index
    %c0_42 = arith.constant 0 : index
    %c0_43 = arith.constant 0 : index
    %250 = vector.load %arg4[%c0_41, %c0_42, %c0_43] : memref<1x4x256xf32, #tpu.memory_space<vmem>>, vector<1x4x256xf32>
    %251 = vector.shape_cast %250 : vector<1x4x256xf32> to vector<4x256xf32>
    %252 = vector.shape_cast %249 : vector<4x256xf32> to vector<1x4x256xf32>
    tpu.vector_store %arg4[%c0_41, %c0_42, %c0_43], %252 {strides = array<i32>} : memref<1x4x256xf32, #tpu.memory_space<vmem>>, vector<1x4x256xf32>,
    return
  }
  func.func @transform_0(%arg0: i32) -> (i32, i32, i32) {
    %c0_i32 = arith.constant 0 : i32
    %c0_i32_0 = arith.constant 0 : i32
    %c0_i32_1 = arith.constant 0 : i32
    return %arg0, %c0_i32, %c0_i32_0 : i32, i32, i32
  }
  func.func @transform_1(%arg0: i32) -> (i32, i32, i32) {
    %c0_i32 = arith.constant 0 : i32
    %c0_i32_0 = arith.constant 0 : i32
    %c0_i32_1 = arith.constant 0 : i32
    %c0_i32_2 = arith.constant 0 : i32
    return %c0_i32, %c0_i32_0, %c0_i32_1 : i32, i32, i32
  }
  func.func @transform_2(%arg0: i32) -> (i32, i32) {
    %c0_i32 = arith.constant 0 : i32
    %c0_i32_0 = arith.constant 0 : i32
    %c0_i32_1 = arith.constant 0 : i32
    return %c0_i32, %c0_i32_0 : i32, i32
  }
  func.func @transform_3(%arg0: i32) -> (i32, i32, i32) {
    %c0_i32 = arith.constant 0 : i32
    %c0_i32_0 = arith.constant 0 : i32
    %c0_i32_1 = arith.constant 0 : i32
    return %arg0, %c0_i32, %c0_i32_0 : i32, i32, i32
  }
}

</mosaic_0001>

<bundles_post_ra>
// kernel: unet_block_forward.1
= control target key start
LH: loop header
LB: loop body
LE: loop exit
PB: predicated region body
PF: predicated region fallthrough
CT: control target
= control target key end

     0   :  { %s1804_s12 = smov 0   ;;  %s2402_s0 = inlined_call_operand.vmem [shape: f32[2,4,256], index: 0, kind: input, shape index: {}]   ;;  %s2403_s1 = inlined_call_operand.vmem [shape: bf16[4,8,72], index: 1, kind: input, shape index: {}]   ;;  %s2404_s2 = inlined_call_operand.vmem [shape: f32[9,256], index: 2, kind: input, shape index: {}]   ;;  %s2405_s3 = inlined_call_operand.vmem [shape: f32[2,4,256], index: 3, kind: output, shape index: {}]  }
   0x1 LB: > { %s1545_s13 = sadd.s32 4294967295, %s1768_s12   ;;  %p1549_p0 = scmp.ge.s32.totalorder %s1768_s12, 1  ;;  %s1768_s12 = sphi %s1804_s12, %s13_s12  }
   0x2   : > { %p137_p1 = scmp.lt.s32.totalorder %s1768_s12, 3 }
   0x4   : > { %p138_p2 = pnand %p1549_p0, %p137_p1 }
   0x5   : > { %v184_v0 = vlaneseq (!%p138_p2)  ;;  %v172_v2 = vld [vmem:[%s2404_s2] sm:$0xff] (!%p138_p2)  ;;  %v173_v5 = vld [vmem:[%s2404_s2 + $0x8] sm:$0xff] (!%p138_p2)  ;;  %s1770_s18 = smov (!%p138_p2), 113   ;;  %s1771_s19 = smov (!%p138_p2), 112   ;;  %vm180_vm0 = vcmask (!%p138_p2), 1043456   ;;  %vm264_vm1 = vcmask (!%p138_p2), 1039360  }
   0x6   : > { %141 = sbr.rel (%p138_p2) target bundleno = 2783 (0xadf), region = 32  ;;  %p161_p3 = scmp.lt.s32.totalorder (!%p138_p2), %s1545_s13, 1  ;;  %v1555_v26 = vld [vmem:[%s2404_s2 + $0x18] ss:$0 sm:$0xff] (!%p138_p2)  ;;  %v1554_v29 = vld [vmem:[%s2404_s2 + $0x10] ss:$0 sm:$0xff] (!%p138_p2) }
   0x7   : > { %v185_v1 = vshrl.u32 (!%p138_p2), %v184_v0, 7  ;;  %s1772_s20 = smov (!%p138_p2), 127   ;;  %s1773_s25 = smov (!%p138_p2), 1   ;;  %vm220_vm2 = vcmask (!%p138_p2), 916480   ;;  %vm296_vm3 = vcmask (!%p138_p2), 7168   ;;  %vm242_vm4 = vcmask (!%p138_p2), 924672  }
   0x8   : > { %s1774_s26 = smov (!%p138_p2), 15   ;;  %s1775_s27 = smov (!%p138_p2), 16   ;;  %vm318_vm5 = vcmask (!%p138_p2), 121856   ;;  %vm340_vm6 = vcmask (!%p138_p2), 130048   ;;  %vm362_vm7 = vcmask (!%p138_p2), 138240   ;;  %vm198_vm8 = vcmask (!%p138_p2), 908288  }
   0x9   : > { %v230_v3 = vsub.s32 (!%p138_p2), 2, %v185_v1  ;;  %v208_v4 = vsub.s32 (!%p138_p2), 1, %v185_v1  ;;  %v252_v10 = vsub.s32 (!%p138_p2), 3, %v185_v1  ;;  %v284_v13 = vsub.s32 (!%p138_p2), 5, %v185_v1  ;;  %s1776_s5 = smov (!%p138_p2), 17   ;;  %s1777_s6 = smov (!%p138_p2), 111  }
   0xa   : > { %v306_v16 = vsub.s32 (!%p138_p2), 6, %v185_v1  ;;  %v328_v19 = vsub.s32 (!%p138_p2), 7, %v185_v1  ;;  %v274_v23 = vsub.s32 (!%p138_p2), 4, %v185_v1  ;;  %v186_v25 = vsub.s32 (!%p138_p2), 0, %v185_v1  ;;  %s1778_s7 = smov (!%p138_p2), 126   ;;  %s1779_s8 = smov (!%p138_p2), 110  }
   0xb   : > { %v231_v6 = vrot.slane (!%p138_p2), %v172_v2, %v230_v3  ;;  %v209_v7 = vrot.slane (!%p138_p2), %v172_v2, %v208_v4  ;;  %v235_v8 = vrot.slane (!%p138_p2), %v173_v5, %v230_v3  ;;  %v213_v9 = vrot.slane (!%p138_p2), %v173_v5, %v208_v4  ;;  %s1780_s9 = smov (!%p138_p2), 96   ;;  %s1781_s10 = smov (!%p138_p2), 95  }
   0xc   : > { %v257_v11 = vrot.slane (!%p138_p2), %v173_v5, %v252_v10  ;;  %v253_v12 = vrot.slane (!%p138_p2), %v172_v2, %v252_v10  ;;  %v289_v14 = vrot.slane (!%p138_p2), %v173_v5, %v284_v13  ;;  %v285_v15 = vrot.slane (!%p138_p2), %v172_v2, %v284_v13  ;;  %s1782_s11 = smov (!%p138_p2), 94  }
   0xd   : > { %238 = vrot.lane.b32.xlu1 %v231_v6, %s1770_s18  ;;  %216 = vrot.lane.b32.xlu0 %v209_v7, %s1771_s19  ;;  %s2407_s13 = smov (!%p161_p3, %s1545_s13), 1  ;;  %v311_v17 = vrot.slane %v173_v5, %v306_v16  ;;  %v307_v18 = vrot.slane %v172_v2, %v306_v16  ;;  %v333_v21 = vrot.slane %v173_v5, %v328_v19  ;;  %vm393_vm9 = vcmask 1031168  }
   0xe   : > { %s1569_s21 = sshll.u32 %s2407_s13, 3  ;;  %v329_v22 = vrot.slane %v172_v2, %v328_v19  ;;  %v1833_v27 = vrot.slane %v172_v2, %v274_v23  ;;  %v1835_v28 = vrot.slane %v173_v5, %v274_v23  ;;  %v187_v32 = vrot.slane %v172_v2, %v186_v25 }
   0xf   : > { %s165_s24 = scalar_lea.vmem %s2402_s0, %s1569_s21  ;;  %v191_v35 = vrot.slane %v173_v5, %v186_v25  ;;  %vm432_vm10 = vcmask 900096   ;;  %vm447_vm11 = vcmask 785408   ;;  %vm462_vm12 = vcmask 777216  }
  0x10   : > { %v176_v20 = vld [vmem:[%s165_s24] sm:$0xff]  ;;  %vm477_vm13 = vcmask 769024   ;;  %vm562_vm14 = vcmask 588800  }
  0x11   : > { %240 = vrot.lane.b32.xlu1 %v235_v8, %s1770_s18  ;;  %218 = vrot.lane.b32.xlu0 %v213_v9, %s1771_s19  ;;  %v178_v24 = vcombine.high %v176_v20, %v176_v20  ;;  %v1841_v30 = vsel %vm180_vm0, %v176_v20, 0.0 }
  0x12   : > { %v280_v33 = vmul.f32 %v1833_v27, %v1841_v30 }
  0x13   : > { %v1844_v31 = vsel %vm180_vm0, %v178_v24, 0.0 }
  0x14   : > { %v281_v34 = vmul.f32 %v1835_v28, %v1844_v31 }
  0x15   : > { %262 = vrot.lane.b32.xlu1 %v257_v11, %s1772_s20  ;;  %260 = vrot.lane.b32.xlu0 %v253_v12, %s1772_s20 }
  0x16   : > { %v1593_v36 = vpack.i.bf16 %v281_v34, %v280_v33 }
  0x19   : > { %294 = vrot.lane.b32.xlu1 %v289_v14, %s1773_s25  ;;  %292 = vrot.lane.b32.xlu0 %v285_v15, %s1773_s25  ;;  %s170_s25 = scalar_lea.vmem %s2405_s3, %s1569_s21 }
  0x1d   : > { %316 = vrot.lane.b32.xlu1 %v311_v17, %s1774_s26  ;;  %314 = vrot.lane.b32.xlu0 %v307_v18, %s1774_s26 }
  0x21   : > { %338 = vrot.lane.b32.xlu1 %v333_v21, %s1775_s27  ;;  %336 = vrot.lane.b32.xlu0 %v329_v22, %s1775_s27 }
  0x25   : > { %360 = vrot.lane.b32.xlu1 %v1555_v26, %s1776_s5  ;;  %358 = vrot.lane.b32.xlu0 %v1554_v29, %s1776_s5 }
  0x29   : > { %194 = vrot.lane.b32.xlu0 %v187_v32, %s1777_s6  ;;  %196 = vrot.lane.b32.xlu1 %v191_v35, %s1777_s6 }
  0x2d   : > { %1594 = vrot.lane.b32.xlu0 %v1593_v36, %s1777_s6 }
  0x7f   : > { %v1855_v37 = vpop.permute.xlu1 %238  ;;  %v1857_v38 = vpop.permute.xlu0 %216 }
  0x80   : > { %v247_v39 = vmul.f32 %v1855_v37, %v1844_v31  ;;  %v225_v40 = vmul.f32 %v1857_v38, %v1844_v31 }
  0x82   : > { %387 = vrot.lane.b32.xlu0 %v247_v39, %s1778_s7  ;;  %373 = vrot.lane.b32.xlu1 %v225_v40, %s1772_s20 }
  0x83   : > { %v1865_v41 = vpop.permute.xlu1 %240  ;;  %v1867_v42 = vpop.permute.xlu0 %218 }
  0x84   : > { %v1887_v49 = vsel %vm220_vm2, %v1857_v38, %v1867_v42  ;;  %v227_v53 = vmul.f32 %v1867_v42, %v1844_v31  ;;  %v1910_v59 = vsel %vm242_vm4, %v1855_v37, %v1865_v41  ;;  %v249_v63 = vmul.f32 %v1865_v41, %v1844_v31 }
  0x85   : > { %v226_v55 = vmul.f32 %v1887_v49, %v1841_v30  ;;  %v248_v1 = vmul.f32 %v1910_v59, %v1841_v30 }
  0x87   : > { %v1869_v43 = vpop.permute.xlu1 %262  ;;  %v1871_v44 = vpop.permute.xlu0 %260  ;;  %v1598_v0 = vpack.i.bf16 %v227_v53, %v226_v55  ;;  %v1603_v8 = vpack.i.bf16 %v249_v63, %v248_v1 }
  0x88   : > { %v269_v45 = vmul.f32 %v1871_v44, %v1844_v31  ;;  %v1878_v46 = vsel %vm264_vm1, %v1871_v44, %v1869_v43  ;;  %v271_v47 = vmul.f32 %v1869_v43, %v1844_v31 }
  0x89   : > { %v270_v48 = vmul.f32 %v1878_v46, %v1841_v30 }
  0x8a   : > { %402 = vrot.lane.b32.xlu1 %v269_v45, %s1771_s19 }
  0x8b   : > { %v1890_v50 = vpop.permute.xlu1 %294  ;;  %v1892_v51 = vpop.permute.xlu0 %292  ;;  %v1608_v52 = vpack.i.bf16 %v271_v47, %v270_v48 }
  0x8c   : > { %v303_v54 = vmul.f32 %v1890_v50, %v1841_v30  ;;  %v1902_v56 = vsel %vm296_vm3, %v1892_v51, %v1890_v50  ;;  %v301_v57 = vmul.f32 %v1892_v51, %v1841_v30 }
  0x8d   : > { %v302_v58 = vmul.f32 %v1902_v56, %v1844_v31 }
  0x8e   : > { %430 = vrot.lane.b32.xlu0 %v303_v54, %s1779_s8  ;;  %1609 = vrot.lane.b32.xlu1 %v1608_v52, %s1771_s19 }
  0x8f   : > { %v1914_v60 = vpop.permute.xlu1 %316  ;;  %v1916_v61 = vpop.permute.xlu0 %314  ;;  %v1613_v62 = vpack.i.bf16 %v302_v58, %v301_v57 }
  0x90   : > { %v1924_v2 = vsel %vm318_vm5, %v1916_v61, %v1914_v60  ;;  %v323_v3 = vmul.f32 %v1916_v61, %v1841_v30  ;;  %v325_v15 = vmul.f32 %v1914_v60, %v1841_v30 }
  0x91   : > { %v324_v4 = vmul.f32 %v1924_v2, %v1844_v31 }
  0x92   : > { %1599 = vrot.lane.b32.xlu0 %v1598_v0, %s1772_s20  ;;  %1614 = vrot.lane.b32.xlu1 %v1613_v62, %s1779_s8 }
  0x93   : > { %v1932_v5 = vpop.permute.xlu1 %338  ;;  %v1934_v6 = vpop.permute.xlu0 %336  ;;  %v1618_v7 = vpack.i.bf16 %v324_v4, %v323_v3 }
  0x94   : > { %v1938_v9 = vsel %vm340_vm6, %v1934_v6, %v1932_v5  ;;  %v345_v10 = vmul.f32 %v1934_v6, %v1841_v30  ;;  %v347_v20 = vmul.f32 %v1932_v5, %v1841_v30 }
  0x95   : > { %v346_v11 = vmul.f32 %v1938_v9, %v1844_v31 }
  0x96   : > { %1604 = vrot.lane.b32.xlu0 %v1603_v8, %s1778_s7  ;;  %1619 = vrot.lane.b32.xlu1 %v1618_v7, %s1780_s9 }
  0x97   : > { %v1623_v12 = vpack.i.bf16 %v346_v11, %v345_v10  ;;  %v1946_v13 = vpop.permute.xlu1 %360  ;;  %v1948_v14 = vpop.permute.xlu0 %358 }
  0x98   : > { %v1955_v16 = vsel %vm362_vm7, %v1948_v14, %v1946_v13  ;;  %v367_v17 = vmul.f32 %v1948_v14, %v1841_v30  ;;  %v369_v21 = vmul.f32 %v1946_v13, %v1841_v30 }
  0x99   : > { %v368_v18 = vmul.f32 %v1955_v16, %v1844_v31 }
  0x9a   : > { %445 = vrot.lane.b32.xlu0 %v325_v15, %s1780_s9  ;;  %1624 = vrot.lane.b32.xlu1 %v1623_v12, %s1781_s10 }
  0x9b   : > { %v1628_v19 = vpack.i.bf16 %v368_v18, %v367_v17  ;;  %v1970_v22 = vpop.permute.xlu0 %194  ;;  %v1972_v23 = vpop.permute.xlu1 %196 }
  0x9c   : > { %v205_v39 = vmul.f32 %v1972_v23, %v1844_v31  ;;  %v1987_v3 = vsel %vm198_vm8, %v1970_v22, %v1972_v23 }
  0x9d   : > { %v204_v11 = vmul.f32 %v1987_v3, %v1841_v30 }
  0x9e   : > { %460 = vrot.lane.b32.xlu0 %v347_v20, %s1781_s10  ;;  %1629 = vrot.lane.b32.xlu1 %v1628_v19, %s1782_s11 }
  0x9f   : > { %v1974_v24 = vpop.permute.xlu0 %1594 }
  0xa0   : > { %v1596_v63 = vunpack.i.l.bf16 %v1974_v24 }
  0xa2   : > { %475 = vrot.lane.b32.xlu0 %v369_v21, %s1782_s11 }
  0xf4   : > { %v374_v25 = vpop.permute.xlu1 %373  ;;  %v388_v26 = vpop.permute.xlu0 %387 }
  0xfc   : > { %v403_v29 = vpop.permute.xlu1 %402 }
 0x100   : > { %v431_v32 = vpop.permute.xlu0 %430  ;;  %v1610_v33 = vpop.permute.xlu1 %1609 }
 0x101   : > { %v1612_v48 = vunpack.i.h.bf16 %v1610_v33  ;;  %v1611_v1 = vunpack.i.l.bf16 %v1610_v33 }
 0x103   : > { %v409_v12 = vsel %vm220_vm2, %v1611_v1, %v1612_v48  ;;  %v408_v30 = vsel %vm220_vm2, %v403_v29, %v1611_v1 }
 0x104   : > { %v1600_v34 = vpop.permute.xlu0 %1599  ;;  %v1615_v35 = vpop.permute.xlu1 %1614 }
 0x105   : > { %v1602_v36 = vunpack.i.h.bf16 %v1600_v34  ;;  %v1616_v53 = vunpack.i.l.bf16 %v1615_v35  ;;  %v1601_v57 = vunpack.i.l.bf16 %v1600_v34  ;;  %v1617_v18 = vunpack.i.h.bf16 %v1615_v35 }
 0x107   : > { %v485_v40 = vpack.c.bf16 %v1602_v36, %v205_v39  ;;  %v489_v4 = vpack.c.bf16 %v1616_v53, %v1596_v63  ;;  %v380_v8 = vsel %vm264_vm1, %v1601_v57, %v1602_v36  ;;  %v379_v21 = vsel %vm264_vm1, %v374_v25, %v1601_v57 }
 0x108   : > { %v1605_v45 = vpop.permute.xlu0 %1604  ;;  %v1978_v47 = vpop.permute.xlu1 %1619  ;;  %v484_v15 = vpack.c.bf16 %v380_v8, %v204_v11  ;;  %v203_v36 = vmul.f32 %v1970_v22, %v1844_v31  ;;  %v1597_v25 = vunpack.i.h.bf16 %v1974_v24 }
 0x109   : > { %v1607_v52 = vunpack.i.h.bf16 %v1605_v45  ;;  %517 = vrot.lane.b32.xlu0 %v485_v40, %s1776_s5  ;;  %v1621_v54 = vunpack.i.l.bf16 %v1978_v47  ;;  %v1606_v58 = vunpack.i.l.bf16 %v1605_v45  ;;  %v1622_v35 = vunpack.i.h.bf16 %v1978_v47 }
 0x10a   : > { %v483_v40 = vpack.c.bf16 %v379_v21, %v203_v36  ;;  %v433_v47 = vsel %vm432_vm10, %v1616_v53, %v1617_v18 }
 0x10b   : > { %v488_v55 = vpack.c.bf16 %v1612_v48, %v1607_v52  ;;  %v395_v10 = vsel %vm393_vm9, %v1606_v58, %v1607_v52  ;;  %v394_v20 = vsel %vm393_vm9, %v388_v26, %v1606_v58  ;;  %v434_v26 = vsel %vm432_vm10, %v1617_v18, %v431_v32 }
 0x10c   : > { %v1625_v62 = vpop.permute.xlu1 %1624  ;;  %v487_v17 = vpack.c.bf16 %v409_v12, %v395_v10  ;;  %v446_v33 = vpop.permute.xlu0 %445  ;;  %v486_v39 = vpack.c.bf16 %v408_v30, %v394_v20  ;;  %v491_v52 = vpack.c.bf16 %v434_v26, %v1597_v25  ;;  %v448_v29 = vsel %vm447_vm11, %v1621_v54, %v1622_v35 }
 0x10d   : > { %v1626_v0 = vunpack.i.l.bf16 %v1625_v62  ;;  %523 = vrot.lane.b32.xlu1 %v488_v55, %s1776_s5  ;;  %v1627_v45 = vunpack.i.h.bf16 %v1625_v62  ;;  %v419_v32 = vsel %vm198_vm8, %v1596_v63, %v1597_v25  ;;  %v1783_v62 = vmov 0  }
 0x10e   : > { %v490_v58 = vpack.c.bf16 %v433_v47, %v419_v32  ;;  %604 = vmatprep.mubr.bf16.mxu0 %v1783_v62  ;;  %888 = vmatprep.mubr.bf16.mxu1 %v1783_v62  ;;  %v449_v1 = vsel %vm447_vm11, %v1622_v35, %v446_v33  ;;  %v183_v32 = vld [vmem:[%s2403_s1] sm:$0xf] }
 0x10f   : > { %v492_v7 = vpack.c.bf16 %v1626_v0, %v1621_v54  ;;  %v463_v55 = vsel %vm462_vm12, %v1626_v0, %v1627_v45 }
 0x110   : > { %v1630_v19 = vpop.permute.xlu1 %1629  ;;  %v461_v31 = vpop.permute.xlu0 %460  ;;  %v493_v57 = vpack.c.bf16 %v463_v55, %v448_v29 }
 0x111   : > { %525 = vrot.lane.b32.xlu1 %v489_v4, %s1776_s5  ;;  %531 = vrot.lane.b32.xlu0 %v492_v7, %s1776_s5  ;;  %v1631_v34 = vunpack.i.l.bf16 %v1630_v19  ;;  %v1632_v24 = vunpack.i.h.bf16 %v1630_v19  ;;  %v464_v54 = vsel %vm462_vm12, %v1627_v45, %v461_v31 }
 0x112   : > { %v494_v63 = vpack.c.bf16 %v464_v54, %v449_v1 }
 0x113   : > { %v495_v48 = vpack.c.bf16 %v1631_v34, %v1631_v34  ;;  %v478_v0 = vsel %vm477_vm13, %v1631_v34, %v1632_v24 }
 0x114   : > { %v476_v53 = vpop.permute.xlu0 %475  ;;  %v496_v4 = vpack.c.bf16 %v478_v0, %v478_v0 }
 0x115   : > { %515 = vrot.lane.b32.xlu1 %v484_v15, %s1776_s5  ;;  %521 = vrot.lane.b32.xlu0 %v487_v17, %s1776_s5  ;;  %v479_v7 = vsel %vm477_vm13, %v1632_v24, %v476_v53 }
 0x116   : > { %v497_v8 = vpack.c.bf16 %v479_v7, %v479_v7 }
 0x119   : > { %519 = vrot.lane.b32.xlu0 %v486_v39, %s1776_s5  ;;  %513 = vrot.lane.b32.xlu1 %v483_v40, %s1776_s5 }
 0x11d   : > { %529 = vrot.lane.b32.xlu0 %v491_v52, %s1776_s5  ;;  %537 = vrot.lane.b32.xlu1 %v495_v48, %s1776_s5 }
 0x121   : > { %533 = vrot.lane.b32.xlu0 %v493_v57, %s1776_s5  ;;  %527 = vrot.lane.b32.xlu1 %v490_v58, %s1776_s5 }
 0x125   : > { %539 = vrot.lane.b32.xlu0 %v496_v4, %s1776_s5  ;;  %535 = vrot.lane.b32.xlu1 %v494_v63, %s1776_s5 }
 0x129   : > { %541 = vrot.lane.b32.xlu1 %v497_v8, %s1776_s5 }
 0x17b   : > { %v518_v10 = vpop.permute.xlu0 %517 }
 0x17f   : > { %v524_v11 = vpop.permute.xlu1 %523 }
 0x183   : > { %v526_v12 = vpop.permute.xlu1 %525  ;;  %v532_v15 = vpop.permute.xlu0 %531 }
 0x187   : > { %v516_v17 = vpop.permute.xlu1 %515  ;;  %v522_v18 = vpop.permute.xlu0 %521 }
 0x188   : > { %v545_v19 = vsel %vm362_vm7, %v516_v17, %v518_v10  ;;  %v547_v34 = vsel %vm362_vm7, %v522_v18, %v524_v11 }
 0x189   : > { %572 = vmatprep.subr.bf16.mxu0 %v545_v19 }
 0x18b   : > { %v520_v20 = vpop.permute.xlu0 %519  ;;  %v514_v21 = vpop.permute.xlu1 %513 }
 0x18c   : > { %v544_v33 = vsel %vm362_vm7, %v514_v21, %v516_v17  ;;  %v546_v39 = vsel %vm362_vm7, %v520_v20, %v522_v18 }
 0x18d   : > { %573 = vmatpush1.bf16.msra.mxu0 %v544_v33 }
 0x18e   : > { %574 = vmatprep.subr.bf16.mxu0 %v547_v34 }
 0x18f   : > { %v530_v36 = vpop.permute.xlu0 %529  ;;  %v538_v30 = vpop.permute.xlu1 %537 }
 0x191   : > { %575 = vmatpush1.bf16.msra.mxu0 %v546_v39 }
 0x193   : > { %v534_v40 = vpop.permute.xlu0 %533  ;;  %v528_v35 = vpop.permute.xlu1 %527 }
 0x194   : > { %v549_v45 = vsel %vm362_vm7, %v528_v35, %v530_v36  ;;  %v548_v26 = vsel %vm362_vm7, %v526_v12, %v528_v35  ;;  %v550_v52 = vsel %vm362_vm7, %v532_v15, %v534_v40 }
 0x195   : > { %576 = vmatprep.subr.bf16.mxu0 %v549_v45 }
 0x196   : > { %577 = vmatpush1.bf16.msra.mxu0 %v548_v26 }
 0x197   : > { %v540_v25 = vpop.permute.xlu0 %539  ;;  %v536_v48 = vpop.permute.xlu1 %535 }
 0x198   : > { %v551_v31 = vsel %vm362_vm7, %v534_v40, %v536_v48  ;;  %v552_v29 = vsel %vm362_vm7, %v538_v30, %v540_v25 }
 0x199   : > { %578 = vmatprep.subr.bf16.mxu0 %v551_v31  ;;  %v567_v24 = vsel %vm180_vm0, %v552_v29, 0 }
 0x19a   : > { %579 = vmatpush1.bf16.msra.mxu0 %v550_v52 }
 0x19b   : > { %v542_v55 = vpop.permute.xlu1 %541 }
 0x19c   : > { %v553_v47 = vsel %vm362_vm7, %v540_v25, %v542_v55 }
 0x19d   : > { %1556 = vmatprep.subr.msk.bf16.mxu0 %vm180_vm0, %v553_v47 }
 0x19e   : > { %581 = vmatpush1.bf16.msra.mxu0 %v567_v24 }
 0x1a1   : > { %1557 = vmatmul.mubr.msk.bf16.vlgmr.msra.gmra.mrb[0].mxu0 %vm562_vm14, %v183_v32 }
 0x1a2   : > { %1172 = vmatprep.mubr.bf16.mxu0 %v1783_v62 }
 0x274   : > { %v606_v57 = vpop.f32.mrb[0].mxu0 }
 0x275   : > { %v608_v58 = vpop.f32.mrb[1].mxu0  ;;  %v617_v54 = vmul.f32 %v606_v57, %v606_v57 }
 0x276   : > { %v610_v0 = vpop.f32.mrb[2].mxu0  ;;  %v613_v53 = vadd.f32 %v608_v58, %v606_v57  ;;  %v618_v1 = vmul.f32 %v608_v58, %v608_v58 }
 0x277   : > { %v611_v63 = vpop.f32.mrb[3].mxu0 }
 0x278   : > { %614 = vadd.xlane.f32.xlu0 %v613_v53  ;;  %v619_v4 = vadd.f32 %v618_v1, %v617_v54 }
 0x27a   : > { %620 = vadd.xlane.f32.xlu1 %v619_v4 }
 0x305   : > { %v615_v7 = vpop.xlane.xlu0 %614 }
 0x306   : > { %v616_v8 = vmul.f32 0.00390625, %v615_v7 }
 0x307   : > { %v621_v10 = vpop.xlane.xlu1 %620 }
 0x308   : > { %v622_v11 = vmul.f32 0.00390625, %v621_v10  ;;  %v623_v12 = vmul.f32 %v616_v8, %v616_v8  ;;  %v625_v18 = vsub.f32 %v606_v57, %v616_v8  ;;  %v626_v19 = vsub.f32 %v608_v58, %v616_v8 }
 0x30a   : > { %v624_v15 = vsub.f32 %v622_v11, %v623_v12 }
 0x30c   : > { %v627_v17 = vadd.f32 1e-05, %v624_v15 }
 0x30e   : > { %1754 = vrsqrt.f32 %v627_v17 }
 0x318   : > { %v1755_v20 = vpop.eup %1754 }
 0x319   : > { %v629_v21 = vmul.f32 %v1755_v20, %v625_v18  ;;  %v630_v33 = vmul.f32 %v1755_v20, %v626_v19 }
 0x31b   : > { %v2042_v34 = vmax.f32 %v629_v21, 0.0  ;;  %v2044_v36 = vmax.f32 %v630_v33, 0.0 }
 0x31d   : > { %v638_v30 = vmul.f32 %v2044_v36, %v1857_v38  ;;  %v639_v39 = vmul.f32 %v2042_v34, %v1887_v49  ;;  %v640_v40 = vmul.f32 %v2044_v36, %v1867_v42  ;;  %v645_v35 = vmul.f32 %v2042_v34, %v1878_v46 }
 0x31e   : > { %v646_v45 = vmul.f32 %v2044_v36, %v1869_v43  ;;  %v642_v26 = vmul.f32 %v2042_v34, %v1910_v59  ;;  %v643_v25 = vmul.f32 %v2044_v36, %v1865_v41  ;;  %v649_v31 = vmul.f32 %v2042_v34, %v1892_v51 }
 0x31f   : > { %664 = vrot.lane.b32.xlu1 %v638_v30, %s1772_s20  ;;  %v1633_v48 = vpack.i.bf16 %v640_v40, %v639_v39  ;;  %v650_v52 = vmul.f32 %v2044_v36, %v1902_v56  ;;  %v647_v47 = vmul.f32 %v2042_v34, %v1833_v27  ;;  %v648_v24 = vmul.f32 %v2044_v36, %v1835_v28 }
 0x320   : > { %v1643_v29 = vpack.i.bf16 %v646_v45, %v645_v35  ;;  %v1638_v55 = vpack.i.bf16 %v643_v25, %v642_v26  ;;  %v652_v57 = vmul.f32 %v2042_v34, %v1916_v61  ;;  %v653_v58 = vmul.f32 %v2044_v36, %v1924_v2 }
 0x321   : > { %1634 = vrot.lane.b32.xlu0 %v1633_v48, %s1772_s20  ;;  %v1653_v32 = vpack.i.bf16 %v650_v52, %v649_v31  ;;  %v1648_v54 = vpack.i.bf16 %v648_v24, %v647_v47  ;;  %v655_v0 = vmul.f32 %v2042_v34, %v1934_v6  ;;  %v656_v53 = vmul.f32 %v2044_v36, %v1938_v9 }
 0x322   : > { %v1658_v1 = vpack.i.bf16 %v653_v58, %v652_v57  ;;  %v658_v63 = vmul.f32 %v2042_v34, %v1948_v14  ;;  %v659_v4 = vmul.f32 %v2044_v36, %v1955_v16  ;;  %v644_v8 = vmul.f32 %v2044_v36, %v1871_v44 }
 0x323   : > { %1644 = vrot.lane.b32.xlu1 %v1643_v29, %s1771_s19  ;;  %v1663_v7 = vpack.i.bf16 %v656_v53, %v655_v0  ;;  %v641_v11 = vmul.f32 %v2044_v36, %v1855_v37  ;;  %v651_v12 = vmul.f32 %v2042_v34, %v1890_v50  ;;  %v654_v15 = vmul.f32 %v2042_v34, %v1914_v60 }
 0x324   : > { %v1668_v10 = vpack.i.bf16 %v659_v4, %v658_v63  ;;  %v657_v17 = vmul.f32 %v2042_v34, %v1932_v5  ;;  %v660_v18 = vmul.f32 %v2042_v34, %v1946_v13  ;;  %v637_v21 = vmul.f32 %v2044_v36, %v1972_v23 }
 0x325   : > { %1639 = vrot.lane.b32.xlu0 %v1638_v55, %s1778_s7 }
 0x327   : > { %692 = vrot.lane.b32.xlu1 %v644_v8, %s1771_s19 }
 0x329   : > { %678 = vrot.lane.b32.xlu0 %v641_v11, %s1778_s7 }
 0x32b   : > { %1654 = vrot.lane.b32.xlu1 %v1653_v32, %s1779_s8 }
 0x32d   : > { %1649 = vrot.lane.b32.xlu0 %v1648_v54, %s1777_s6  ;;  %v636_v54 = vmul.f32 %v2042_v34, %v1987_v3 }
 0x32f   : > { %1659 = vrot.lane.b32.xlu1 %v1658_v1, %s1780_s9 }
 0x331   : > { %720 = vrot.lane.b32.xlu0 %v651_v12, %s1779_s8  ;;  %v635_v12 = vmul.f32 %v2044_v36, %v1970_v22 }
 0x333   : > { %1664 = vrot.lane.b32.xlu1 %v1663_v7, %s1781_s10 }
 0x335   : > { %734 = vrot.lane.b32.xlu0 %v654_v15, %s1780_s9 }
 0x337   : > { %1669 = vrot.lane.b32.xlu1 %v1668_v10, %s1782_s11 }
 0x339   : > { %748 = vrot.lane.b32.xlu0 %v657_v17, %s1781_s10 }
 0x33d   : > { %762 = vrot.lane.b32.xlu0 %v660_v18, %s1782_s11 }
 0x391   : > { %v665_v19 = vpop.permute.xlu1 %664 }
 0x393   : > { %v1635_v20 = vpop.permute.xlu0 %1634 }
 0x394   : > { %v1637_v33 = vunpack.i.h.bf16 %v1635_v20  ;;  %v1636_v52 = vunpack.i.l.bf16 %v1635_v20 }
 0x395   : > { %v1645_v30 = vpop.permute.xlu1 %1644 }
 0x396   : > { %v771_v39 = vpack.c.bf16 %v1637_v33, %v637_v21  ;;  %v1647_v35 = vunpack.i.h.bf16 %v1645_v30  ;;  %v671_v58 = vsel %vm264_vm1, %v1636_v52, %v1637_v33  ;;  %v1646_v7 = vunpack.i.l.bf16 %v1645_v30 }
 0x397   : > { %v1640_v40 = vpop.permute.xlu0 %1639  ;;  %v770_v4 = vpack.c.bf16 %v671_v58, %v636_v54  ;;  %v670_v8 = vsel %vm264_vm1, %v665_v19, %v1636_v52 }
 0x398   : > { %v1642_v45 = vunpack.i.h.bf16 %v1640_v40  ;;  %803 = vrot.lane.b32.xlu0 %v771_v39, %s1776_s5  ;;  %v1641_v0 = vunpack.i.l.bf16 %v1640_v40  ;;  %v769_v34 = vpack.c.bf16 %v670_v8, %v635_v12  ;;  %v699_v21 = vsel %vm220_vm2, %v1646_v7, %v1647_v35 }
 0x399   : > { %v693_v26 = vpop.permute.xlu1 %692 }
 0x39a   : > { %v774_v25 = vpack.c.bf16 %v1647_v35, %v1642_v45  ;;  %v685_v17 = vsel %vm393_vm9, %v1641_v0, %v1642_v45  ;;  %v698_v36 = vsel %vm220_vm2, %v693_v26, %v1646_v7 }
 0x39b   : > { %v679_v48 = vpop.permute.xlu0 %678  ;;  %v773_v19 = vpack.c.bf16 %v699_v21, %v685_v17 }
 0x39c   : > { %809 = vrot.lane.b32.xlu1 %v774_v25, %s1776_s5  ;;  %v684_v33 = vsel %vm393_vm9, %v679_v48, %v1641_v0 }
 0x39d   : > { %v1655_v31 = vpop.permute.xlu1 %1654  ;;  %v772_v25 = vpack.c.bf16 %v698_v36, %v684_v33 }
 0x39e   : > { %v1656_v55 = vunpack.i.l.bf16 %v1655_v31  ;;  %v1657_v30 = vunpack.i.h.bf16 %v1655_v31 }
 0x39f   : > { %v1650_v29 = vpop.permute.xlu0 %1649 }
 0x3a0   : > { %v1651_v47 = vunpack.i.l.bf16 %v1650_v29  ;;  %v1652_v20 = vunpack.i.h.bf16 %v1650_v29  ;;  %v722_v29 = vsel %vm432_vm10, %v1656_v55, %v1657_v30 }
 0x3a1   : > { %v1660_v24 = vpop.permute.xlu1 %1659 }
 0x3a2   : > { %v775_v32 = vpack.c.bf16 %v1656_v55, %v1651_v47  ;;  %v1661_v1 = vunpack.i.l.bf16 %v1660_v24  ;;  %v709_v45 = vsel %vm198_vm8, %v1651_v47, %v1652_v20  ;;  %v1662_v31 = vunpack.i.h.bf16 %v1660_v24 }
 0x3a3   : > { %v721_v57 = vpop.permute.xlu0 %720  ;;  %v776_v48 = vpack.c.bf16 %v722_v29, %v709_v45 }
 0x3a4   : > { %811 = vrot.lane.b32.xlu1 %v775_v32, %s1776_s5  ;;  %v723_v52 = vsel %vm432_vm10, %v1657_v30, %v721_v57  ;;  %v736_v57 = vsel %vm447_vm11, %v1661_v1, %v1662_v31 }
 0x3a5   : > { %v1665_v53 = vpop.permute.xlu1 %1664  ;;  %v777_v58 = vpack.c.bf16 %v723_v52, %v1652_v20 }
 0x3a6   : > { %v1666_v63 = vunpack.i.l.bf16 %v1665_v53  ;;  %v1667_v35 = vunpack.i.h.bf16 %v1665_v53 }
 0x3a7   : > { %v735_v11 = vpop.permute.xlu0 %734 }
 0x3a8   : > { %v778_v10 = vpack.c.bf16 %v1666_v63, %v1661_v1  ;;  %801 = vrot.lane.b32.xlu1 %v770_v4, %s1776_s5  ;;  %v737_v26 = vsel %vm447_vm11, %v1662_v31, %v735_v11  ;;  %v750_v0 = vsel %vm462_vm12, %v1666_v63, %v1667_v35 }
 0x3a9   : > { %v1670_v15 = vpop.permute.xlu1 %1669  ;;  %v779_v24 = vpack.c.bf16 %v750_v0, %v736_v57 }
 0x3aa   : > { %v1671_v18 = vunpack.i.l.bf16 %v1670_v15  ;;  %817 = vrot.lane.b32.xlu0 %v778_v10, %s1776_s5  ;;  %v1672_v47 = vunpack.i.h.bf16 %v1670_v15 }
 0x3ab   : > { %v749_v40 = vpop.permute.xlu0 %748 }
 0x3ac   : > { %799 = vrot.lane.b32.xlu1 %v769_v34, %s1776_s5  ;;  %v781_v39 = vpack.c.bf16 %v1671_v18, %v1671_v18  ;;  %v751_v32 = vsel %vm462_vm12, %v1667_v35, %v749_v40  ;;  %v764_v53 = vsel %vm477_vm13, %v1671_v18, %v1672_v47 }
 0x3ad   : > { %v780_v4 = vpack.c.bf16 %v751_v32, %v737_v26  ;;  %v782_v8 = vpack.c.bf16 %v764_v53, %v764_v53 }
 0x3ae   : > { %807 = vrot.lane.b32.xlu0 %v773_v19, %s1776_s5 }
 0x3af   : > { %v763_v54 = vpop.permute.xlu0 %762 }
 0x3b0   : > { %823 = vrot.lane.b32.xlu1 %v781_v39, %s1776_s5  ;;  %v765_v55 = vsel %vm477_vm13, %v1672_v47, %v763_v54  ;;  %v1558_v54 = vld [vmem:[%s2403_s1 + $0x4] sm:$0xf] }
 0x3b1   : > { %v783_v7 = vpack.c.bf16 %v765_v55, %v765_v55 }
 0x3b2   : > { %805 = vrot.lane.b32.xlu0 %v772_v25, %s1776_s5 }
 0x3b4   : > { %813 = vrot.lane.b32.xlu1 %v776_v48, %s1776_s5 }
 0x3b6   : > { %815 = vrot.lane.b32.xlu0 %v777_v58, %s1776_s5 }
 0x3b8   : > { %821 = vrot.lane.b32.xlu1 %v780_v4, %s1776_s5 }
 0x3ba   : > { %819 = vrot.lane.b32.xlu0 %v779_v24, %s1776_s5 }
 0x3bc   : > { %827 = vrot.lane.b32.xlu1 %v783_v7, %s1776_s5 }
 0x3be   : > { %825 = vrot.lane.b32.xlu0 %v782_v8, %s1776_s5 }
 0x40a   : > { %v804_v11 = vpop.permute.xlu0 %803 }
 0x40e   : > { %v810_v63 = vpop.permute.xlu1 %809 }
 0x416   : > { %v812_v10 = vpop.permute.xlu1 %811 }
 0x41a   : > { %v802_v12 = vpop.permute.xlu1 %801 }
 0x41b   : > { %v830_v15 = vsel %vm362_vm7, %v802_v12, %v804_v11 }
 0x41c   : > { %v818_v1 = vpop.permute.xlu0 %817  ;;  %856 = vmatprep.subr.bf16.mxu1 %v830_v15 }
 0x41e   : > { %v800_v17 = vpop.permute.xlu1 %799 }
 0x41f   : > { %v829_v34 = vsel %vm362_vm7, %v800_v17, %v802_v12 }
 0x420   : > { %v808_v18 = vpop.permute.xlu0 %807  ;;  %857 = vmatpush1.bf16.msra.mxu1 %v829_v34 }
 0x421   : > { %v832_v20 = vsel %vm362_vm7, %v808_v18, %v810_v63 }
 0x422   : > { %858 = vmatprep.subr.bf16.mxu1 %v832_v20  ;;  %v824_v21 = vpop.permute.xlu1 %823 }
 0x424   : > { %v806_v19 = vpop.permute.xlu0 %805 }
 0x425   : > { %v831_v33 = vsel %vm362_vm7, %v806_v19, %v808_v18 }
 0x426   : > { %859 = vmatpush1.bf16.msra.mxu1 %v831_v33  ;;  %v814_v30 = vpop.permute.xlu1 %813 }
 0x427   : > { %v833_v45 = vsel %vm362_vm7, %v812_v10, %v814_v30 }
 0x428   : > { %v816_v39 = vpop.permute.xlu0 %815 }
 0x429   : > { %v834_v40 = vsel %vm362_vm7, %v814_v30, %v816_v39 }
 0x42a   : > { %860 = vmatprep.subr.bf16.mxu1 %v834_v40  ;;  %v822_v36 = vpop.permute.xlu1 %821 }
 0x42b   : > { %861 = vmatpush1.bf16.msra.mxu1 %v833_v45 }
 0x42c   : > { %v820_v25 = vpop.permute.xlu0 %819 }
 0x42d   : > { %v836_v52 = vsel %vm362_vm7, %v820_v25, %v822_v36  ;;  %v835_v35 = vsel %vm362_vm7, %v818_v1, %v820_v25 }
 0x42e   : > { %862 = vmatprep.subr.bf16.mxu1 %v836_v52  ;;  %v828_v29 = vpop.permute.xlu1 %827 }
 0x42f   : > { %863 = vmatpush1.bf16.msra.mxu1 %v835_v35 }
 0x430   : > { %v826_v48 = vpop.permute.xlu0 %825 }
 0x431   : > { %v837_v31 = vsel %vm362_vm7, %v824_v21, %v826_v48  ;;  %v838_v32 = vsel %vm362_vm7, %v826_v48, %v828_v29 }
 0x432   : > { %1559 = vmatprep.subr.msk.bf16.mxu1 %vm180_vm0, %v838_v32  ;;  %v851_v58 = vsel %vm180_vm0, %v837_v31, 0 }
 0x433   : > { %865 = vmatpush1.bf16.msra.mxu1 %v851_v58 }
 0x436   : > { %1560 = vmatmul.mubr.msk.bf16.vlgmr.msra.gmra.mrb[0].mxu1 %vm562_vm14, %v1558_v54 }
 0x437   : > { %1456 = vmatprep.mubr.bf16.mxu1 %v1783_v62 }
 0x509   : > { %v890_v26 = vpop.f32.mrb[0].mxu1 }
 0x50a   : > { %v892_v47 = vpop.f32.mrb[1].mxu1  ;;  %v901_v0 = vmul.f32 %v890_v26, %v890_v26 }
 0x50b   : > { %v894_v4 = vpop.f32.mrb[2].mxu1  ;;  %v897_v55 = vadd.f32 %v892_v47, %v890_v26  ;;  %v902_v57 = vmul.f32 %v892_v47, %v892_v47 }
 0x50c   : > { %v895_v24 = vpop.f32.mrb[3].mxu1 }
 0x50d   : > { %898 = vadd.xlane.f32.xlu0 %v897_v55  ;;  %v903_v53 = vadd.f32 %v902_v57, %v901_v0 }
 0x50f   : > { %904 = vadd.xlane.f32.xlu1 %v903_v53 }
 0x59a   : > { %v899_v7 = vpop.xlane.xlu0 %898 }
 0x59b   : > { %v900_v8 = vmul.f32 0.00390625, %v899_v7 }
 0x59c   : > { %v905_v63 = vpop.xlane.xlu1 %904 }
 0x59d   : > { %v906_v10 = vmul.f32 0.00390625, %v905_v63  ;;  %v907_v11 = vmul.f32 %v900_v8, %v900_v8  ;;  %v909_v1 = vsub.f32 %v890_v26, %v900_v8  ;;  %v910_v62 = vsub.f32 %v892_v47, %v900_v8 }
 0x59f   : > { %v908_v12 = vsub.f32 %v906_v10, %v907_v11 }
 0x5a1   : > { %v911_v15 = vadd.f32 1e-05, %v908_v12 }
 0x5a3   : > { %1756 = vrsqrt.f32 %v911_v15 }
 0x5ad   : > { %v1757_v17 = vpop.eup %1756 }
 0x5ae   : > { %v913_v34 = vmul.f32 %v1757_v17, %v909_v1  ;;  %v914_v18 = vmul.f32 %v1757_v17, %v910_v62 }
 0x5b0   : > { %v2160_v20 = vmax.f32 %v913_v34, 0.0  ;;  %v2162_v21 = vmax.f32 %v914_v18, 0.0 }
 0x5b2   : > { %v922_v19 = vmul.f32 %v2162_v21, %v1857_v38  ;;  %v923_v33 = vmul.f32 %v2160_v20, %v1887_v49  ;;  %v924_v30 = vmul.f32 %v2162_v21, %v1867_v42  ;;  %v929_v39 = vmul.f32 %v2160_v20, %v1878_v46 }
 0x5b3   : > { %v930_v40 = vmul.f32 %v2162_v21, %v1869_v43  ;;  %v926_v36 = vmul.f32 %v2160_v20, %v1910_v59  ;;  %v927_v45 = vmul.f32 %v2162_v21, %v1865_v41  ;;  %v933_v52 = vmul.f32 %v2160_v20, %v1892_v51 }
 0x5b4   : > { %948 = vrot.lane.b32.xlu1 %v922_v19, %s1772_s20  ;;  %v1673_v25 = vpack.i.bf16 %v924_v30, %v923_v33  ;;  %v934_v35 = vmul.f32 %v2162_v21, %v1902_v56  ;;  %v931_v31 = vmul.f32 %v2160_v20, %v1833_v27  ;;  %v932_v32 = vmul.f32 %v2162_v21, %v1835_v28 }
 0x5b5   : > { %v1683_v29 = vpack.i.bf16 %v930_v40, %v929_v39  ;;  %v1678_v48 = vpack.i.bf16 %v927_v45, %v926_v36  ;;  %v936_v54 = vmul.f32 %v2160_v20, %v1916_v61  ;;  %v937_v26 = vmul.f32 %v2162_v21, %v1924_v2 }
 0x5b6   : > { %1674 = vrot.lane.b32.xlu0 %v1673_v25, %s1772_s20  ;;  %v1693_v58 = vpack.i.bf16 %v934_v35, %v933_v52  ;;  %v1688_v47 = vpack.i.bf16 %v932_v32, %v931_v31  ;;  %v939_v0 = vmul.f32 %v2160_v20, %v1934_v6  ;;  %v940_v4 = vmul.f32 %v2162_v21, %v1938_v9 }
 0x5b7   : > { %v1698_v55 = vpack.i.bf16 %v937_v26, %v936_v54  ;;  %v942_v57 = vmul.f32 %v2160_v20, %v1948_v14  ;;  %v943_v24 = vmul.f32 %v2162_v21, %v1955_v16  ;;  %v928_v7 = vmul.f32 %v2162_v21, %v1871_v44 }
 0x5b8   : > { %1684 = vrot.lane.b32.xlu1 %v1683_v29, %s1771_s19  ;;  %v1703_v53 = vpack.i.bf16 %v940_v4, %v939_v0  ;;  %v925_v63 = vmul.f32 %v2162_v21, %v1855_v37  ;;  %v935_v10 = vmul.f32 %v2160_v20, %v1890_v50  ;;  %v938_v11 = vmul.f32 %v2160_v20, %v1914_v60 }
 0x5b9   : > { %v1708_v8 = vpack.i.bf16 %v943_v24, %v942_v57  ;;  %v941_v12 = vmul.f32 %v2160_v20, %v1932_v5  ;;  %v944_v15 = vmul.f32 %v2160_v20, %v1946_v13  ;;  %v921_v17 = vmul.f32 %v2162_v21, %v1972_v23 }
 0x5ba   : > { %1679 = vrot.lane.b32.xlu0 %v1678_v48, %s1778_s7  ;;  %v920_v26 = vmul.f32 %v2160_v20, %v1987_v3 }
 0x5bc   : > { %976 = vrot.lane.b32.xlu1 %v928_v7, %s1771_s19  ;;  %v919_v7 = vmul.f32 %v2162_v21, %v1970_v22 }
 0x5be   : > { %962 = vrot.lane.b32.xlu0 %v925_v63, %s1778_s7 }
 0x5c0   : > { %1694 = vrot.lane.b32.xlu1 %v1693_v58, %s1779_s8 }
 0x5c2   : > { %1689 = vrot.lane.b32.xlu0 %v1688_v47, %s1777_s6 }
 0x5c4   : > { %1699 = vrot.lane.b32.xlu1 %v1698_v55, %s1780_s9 }
 0x5c6   : > { %1004 = vrot.lane.b32.xlu0 %v935_v10, %s1779_s8 }
 0x5c8   : > { %1704 = vrot.lane.b32.xlu1 %v1703_v53, %s1781_s10 }
 0x5ca   : > { %1018 = vrot.lane.b32.xlu0 %v938_v11, %s1780_s9 }
 0x5cc   : > { %1709 = vrot.lane.b32.xlu1 %v1708_v8, %s1782_s11 }
 0x5ce   : > { %1032 = vrot.lane.b32.xlu0 %v941_v12, %s1781_s10 }
 0x5d2   : > { %1046 = vrot.lane.b32.xlu0 %v944_v15, %s1782_s11 }
 0x626   : > { %v949_v1 = vpop.permute.xlu1 %948 }
 0x628   : > { %v1675_v62 = vpop.permute.xlu0 %1674 }
 0x629   : > { %v1677_v34 = vunpack.i.h.bf16 %v1675_v62  ;;  %v1676_v52 = vunpack.i.l.bf16 %v1675_v62 }
 0x62a   : > { %v1685_v18 = vpop.permute.xlu1 %1684 }
 0x62b   : > { %v1055_v19 = vpack.c.bf16 %v1677_v34, %v921_v17  ;;  %v1687_v30 = vunpack.i.h.bf16 %v1685_v18  ;;  %v955_v58 = vsel %vm264_vm1, %v1676_v52, %v1677_v34  ;;  %v954_v24 = vsel %vm264_vm1, %v949_v1, %v1676_v52 }
 0x62c   : > { %v1680_v33 = vpop.permute.xlu0 %1679  ;;  %v1054_v4 = vpack.c.bf16 %v955_v58, %v920_v26  ;;  %v1686_v53 = vunpack.i.l.bf16 %v1685_v18  ;;  %v1053_v11 = vpack.c.bf16 %v954_v24, %v919_v7 }
 0x62d   : > { %v1682_v39 = vunpack.i.h.bf16 %v1680_v33  ;;  %1087 = vrot.lane.b32.xlu0 %v1055_v19, %s1776_s5  ;;  %v1681_v47 = vunpack.i.l.bf16 %v1680_v33 }
 0x62e   : > { %v977_v40 = vpop.permute.xlu1 %976  ;;  %v983_v15 = vsel %vm220_vm2, %v1686_v53, %v1687_v30 }
 0x62f   : > { %v1058_v36 = vpack.c.bf16 %v1687_v30, %v1682_v39  ;;  %v969_v10 = vsel %vm393_vm9, %v1681_v47, %v1682_v39  ;;  %v982_v19 = vsel %vm220_vm2, %v977_v40, %v1686_v53 }
 0x630   : > { %v963_v45 = vpop.permute.xlu0 %962  ;;  %v1057_v17 = vpack.c.bf16 %v983_v15, %v969_v10 }
 0x631   : > { %1093 = vrot.lane.b32.xlu1 %v1058_v36, %s1776_s5  ;;  %v968_v1 = vsel %vm393_vm9, %v963_v45, %v1681_v47 }
 0x632   : > { %v1695_v25 = vpop.permute.xlu1 %1694  ;;  %v1056_v39 = vpack.c.bf16 %v982_v19, %v968_v1 }
 0x633   : > { %v1696_v29 = vunpack.i.l.bf16 %v1695_v25  ;;  %v1697_v21 = vunpack.i.h.bf16 %v1695_v25 }
 0x634   : > { %v1690_v35 = vpop.permute.xlu0 %1689 }
 0x635   : > { %v1691_v48 = vunpack.i.l.bf16 %v1690_v35  ;;  %v1692_v62 = vunpack.i.h.bf16 %v1690_v35  ;;  %v1006_v30 = vsel %vm432_vm10, %v1696_v29, %v1697_v21 }
 0x636   : > { %v1700_v31 = vpop.permute.xlu1 %1699 }
 0x637   : > { %v1059_v32 = vpack.c.bf16 %v1696_v29, %v1691_v48  ;;  %v1701_v55 = vunpack.i.l.bf16 %v1700_v31  ;;  %v993_v33 = vsel %vm198_vm8, %v1691_v48, %v1692_v62  ;;  %v1702_v45 = vunpack.i.h.bf16 %v1700_v31 }
 0x638   : > { %v1005_v54 = vpop.permute.xlu0 %1004  ;;  %v1060_v35 = vpack.c.bf16 %v1006_v30, %v993_v33 }
 0x639   : > { %1095 = vrot.lane.b32.xlu1 %v1059_v32, %s1776_s5  ;;  %v1007_v36 = vsel %vm432_vm10, %v1697_v21, %v1005_v54  ;;  %v1020_v29 = vsel %vm447_vm11, %v1701_v55, %v1702_v45 }
 0x63a   : > { %v1705_v0 = vpop.permute.xlu1 %1704  ;;  %v1061_v32 = vpack.c.bf16 %v1007_v36, %v1692_v62 }
 0x63b   : > { %v1706_v57 = vunpack.i.l.bf16 %v1705_v0  ;;  %v1707_v52 = vunpack.i.h.bf16 %v1705_v0 }
 0x63c   : > { %v1019_v63 = vpop.permute.xlu0 %1018 }
 0x63d   : > { %v1062_v8 = vpack.c.bf16 %v1706_v57, %v1701_v55  ;;  %1085 = vrot.lane.b32.xlu1 %v1054_v4, %s1776_s5  ;;  %v1034_v40 = vsel %vm462_vm12, %v1706_v57, %v1707_v52  ;;  %v1021_v48 = vsel %vm447_vm11, %v1702_v45, %v1019_v63 }
 0x63e   : > { %v1710_v20 = vpop.permute.xlu1 %1709  ;;  %v1063_v0 = vpack.c.bf16 %v1034_v40, %v1020_v29 }
 0x63f   : > { %v1711_v12 = vunpack.i.l.bf16 %v1710_v20  ;;  %1101 = vrot.lane.b32.xlu0 %v1062_v8, %s1776_s5  ;;  %v1712_v26 = vunpack.i.h.bf16 %v1710_v20 }
 0x640   : > { %v1033_v18 = vpop.permute.xlu0 %1032 }
 0x641   : > { %1083 = vrot.lane.b32.xlu1 %v1053_v11, %s1776_s5  ;;  %v1065_v34 = vpack.c.bf16 %v1711_v12, %v1711_v12  ;;  %v1035_v25 = vsel %vm462_vm12, %v1707_v52, %v1033_v18  ;;  %v1048_v31 = vsel %vm477_vm13, %v1711_v12, %v1712_v26 }
 0x642   : > { %v1064_v47 = vpack.c.bf16 %v1035_v25, %v1021_v48  ;;  %v1066_v24 = vpack.c.bf16 %v1048_v31, %v1048_v31 }
 0x643   : > { %1091 = vrot.lane.b32.xlu0 %v1057_v17, %s1776_s5 }
 0x644   : > { %v1047_v58 = vpop.permute.xlu0 %1046 }
 0x645   : > { %1107 = vrot.lane.b32.xlu1 %v1065_v34, %s1776_s5  ;;  %v1049_v54 = vsel %vm477_vm13, %v1712_v26, %v1047_v58 }
 0x646   : > { %v1067_v4 = vpack.c.bf16 %v1049_v54, %v1049_v54 }
 0x647   : > { %1089 = vrot.lane.b32.xlu0 %v1056_v39, %s1776_s5 }
 0x649   : > { %1097 = vrot.lane.b32.xlu1 %v1060_v35, %s1776_s5 }
 0x64b   : > { %1099 = vrot.lane.b32.xlu0 %v1061_v32, %s1776_s5  ;;  %v1561_v32 = vld [vmem:[%s2403_s1 + $0x8] sm:$0xf] }
 0x64d   : > { %1105 = vrot.lane.b32.xlu1 %v1064_v47, %s1776_s5 }
 0x64f   : > { %1103 = vrot.lane.b32.xlu0 %v1063_v0, %s1776_s5 }
 0x651   : > { %1111 = vrot.lane.b32.xlu1 %v1067_v4, %s1776_s5 }
 0x653   : > { %1109 = vrot.lane.b32.xlu0 %v1066_v24, %s1776_s5 }
 0x69f   : > { %v1088_v7 = vpop.permute.xlu0 %1087 }
 0x6a3   : > { %v1094_v57 = vpop.permute.xlu1 %1093 }
 0x6ab   : > { %v1096_v53 = vpop.permute.xlu1 %1095 }
 0x6af   : > { %v1086_v8 = vpop.permute.xlu1 %1085 }
 0x6b0   : > { %v1114_v55 = vsel %vm362_vm7, %v1086_v8, %v1088_v7 }
 0x6b1   : > { %v1102_v63 = vpop.permute.xlu0 %1101  ;;  %1140 = vmatprep.subr.bf16.mxu0 %v1114_v55 }
 0x6b3   : > { %v1084_v10 = vpop.permute.xlu1 %1083 }
 0x6b4   : > { %v1113_v20 = vsel %vm362_vm7, %v1084_v10, %v1086_v8 }
 0x6b5   : > { %v1092_v11 = vpop.permute.xlu0 %1091  ;;  %1141 = vmatpush1.bf16.msra.mxu0 %v1113_v20 }
 0x6b6   : > { %v1116_v12 = vsel %vm362_vm7, %v1092_v11, %v1094_v57 }
 0x6b7   : > { %1142 = vmatprep.subr.bf16.mxu0 %v1116_v12  ;;  %v1108_v15 = vpop.permute.xlu1 %1107 }
 0x6b9   : > { %v1090_v62 = vpop.permute.xlu0 %1089 }
 0x6ba   : > { %v1115_v17 = vsel %vm362_vm7, %v1090_v62, %v1092_v11 }
 0x6bb   : > { %1143 = vmatpush1.bf16.msra.mxu0 %v1115_v17  ;;  %v1098_v1 = vpop.permute.xlu1 %1097 }
 0x6bc   : > { %v1117_v18 = vsel %vm362_vm7, %v1096_v53, %v1098_v1 }
 0x6bd   : > { %v1100_v21 = vpop.permute.xlu0 %1099 }
 0x6be   : > { %v1118_v34 = vsel %vm362_vm7, %v1098_v1, %v1100_v21 }
 0x6bf   : > { %1144 = vmatprep.subr.bf16.mxu0 %v1118_v34  ;;  %v1106_v19 = vpop.permute.xlu1 %1105 }
 0x6c0   : > { %1145 = vmatpush1.bf16.msra.mxu0 %v1117_v18 }
 0x6c1   : > { %v1104_v33 = vpop.permute.xlu0 %1103 }
 0x6c2   : > { %v1119_v39 = vsel %vm362_vm7, %v1102_v63, %v1104_v33  ;;  %v1120_v30 = vsel %vm362_vm7, %v1104_v33, %v1106_v19 }
 0x6c3   : > { %1146 = vmatprep.subr.bf16.mxu0 %v1120_v30  ;;  %v1112_v36 = vpop.permute.xlu1 %1111 }
 0x6c4   : > { %1147 = vmatpush1.bf16.msra.mxu0 %v1119_v39 }
 0x6c5   : > { %v1110_v52 = vpop.permute.xlu0 %1109 }
 0x6c6   : > { %v1121_v35 = vsel %vm362_vm7, %v1108_v15, %v1110_v52  ;;  %v1122_v45 = vsel %vm362_vm7, %v1110_v52, %v1112_v36 }
 0x6c7   : > { %v1135_v25 = vsel %vm180_vm0, %v1121_v35, 0  ;;  %1562 = vmatprep.subr.msk.bf16.mxu0 %vm180_vm0, %v1122_v45 }
 0x6c8   : > { %1149 = vmatpush1.bf16.msra.mxu0 %v1135_v25 }
 0x6cb   : > { %1563 = vmatmul.mubr.msk.bf16.vlgmr.msra.gmra.mrb[4].mxu0 %vm562_vm14, %v1561_v32 }
 0x79e   : > { %v1174_v58 = vpop.f32.mrb[4].mxu0 }
 0x79f   : > { %v1185_v40 = vmul.f32 %v1174_v58, %v1174_v58  ;;  %v1176_v48 = vpop.f32.mrb[5].mxu0 }
 0x7a0   : > { %v1181_v26 = vadd.f32 %v1176_v48, %v1174_v58  ;;  %v1186_v47 = vmul.f32 %v1176_v48, %v1176_v48  ;;  %v1178_v29 = vpop.f32.mrb[6].mxu0 }
 0x7a1   : > { %v1179_v54 = vpop.f32.mrb[7].mxu0 }
 0x7a2   : > { %1182 = vadd.xlane.f32.xlu0 %v1181_v26  ;;  %v1187_v0 = vadd.f32 %v1186_v47, %v1185_v40 }
 0x7a4   : > { %1188 = vadd.xlane.f32.xlu1 %v1187_v0 }
 0x82f   : > { %v1183_v31 = vpop.xlane.xlu0 %1182 }
 0x830   : > { %v1184_v4 = vmul.f32 0.00390625, %v1183_v31 }
 0x831   : > { %v1189_v24 = vpop.xlane.xlu1 %1188 }
 0x832   : > { %v1190_v57 = vmul.f32 0.00390625, %v1189_v24  ;;  %v1191_v53 = vmul.f32 %v1184_v4, %v1184_v4  ;;  %v1193_v55 = vsub.f32 %v1174_v58, %v1184_v4  ;;  %v1194_v63 = vsub.f32 %v1176_v48, %v1184_v4 }
 0x834   : > { %v1192_v7 = vsub.f32 %v1190_v57, %v1191_v53 }
 0x836   : > { %v1195_v8 = vadd.f32 1e-05, %v1192_v7 }
 0x838   : > { %1758 = vrsqrt.f32 %v1195_v8 }
 0x842   : > { %v1759_v10 = vpop.eup %1758 }
 0x843   : > { %v1197_v20 = vmul.f32 %v1759_v10, %v1193_v55  ;;  %v1198_v11 = vmul.f32 %v1759_v10, %v1194_v63 }
 0x845   : > { %v2277_v12 = vmax.f32 %v1197_v20, 0.0  ;;  %v2279_v15 = vmax.f32 %v1198_v11, 0.0 }
 0x847   : > { %v1206_v62 = vmul.f32 %v2279_v15, %v1857_v38  ;;  %v1207_v17 = vmul.f32 %v2277_v12, %v1887_v49  ;;  %v1208_v1 = vmul.f32 %v2279_v15, %v1867_v42  ;;  %v1213_v21 = vmul.f32 %v2277_v12, %v1878_v46 }
 0x848   : > { %v1214_v34 = vmul.f32 %v2279_v15, %v1869_v43  ;;  %v1210_v18 = vmul.f32 %v2277_v12, %v1910_v59  ;;  %v1211_v19 = vmul.f32 %v2279_v15, %v1865_v41  ;;  %v1217_v49 = vmul.f32 %v2277_v12, %v1892_v51 }
 0x849   : > { %1232 = vrot.lane.b32.xlu1 %v1206_v62, %s1772_s20  ;;  %v1713_v38 = vpack.i.bf16 %v1208_v1, %v1207_v17  ;;  %v1218_v42 = vmul.f32 %v2279_v15, %v1902_v56  ;;  %v1215_v43 = vmul.f32 %v2277_v12, %v1833_v27  ;;  %v1216_v59 = vmul.f32 %v2279_v15, %v1835_v28 }
 0x84a   : > { %v1723_v33 = vpack.i.bf16 %v1214_v34, %v1213_v21  ;;  %v1718_v46 = vpack.i.bf16 %v1211_v19, %v1210_v18  ;;  %v1220_v39 = vmul.f32 %v2277_v12, %v1916_v61  ;;  %v1221_v51 = vmul.f32 %v2279_v15, %v1924_v2 }
 0x84b   : > { %1714 = vrot.lane.b32.xlu0 %v1713_v38, %s1772_s20  ;;  %v1733_v41 = vpack.i.bf16 %v1218_v42, %v1217_v49  ;;  %v1728_v30 = vpack.i.bf16 %v1216_v59, %v1215_v43  ;;  %v1223_v56 = vmul.f32 %v2277_v12, %v1934_v6  ;;  %v1224_v36 = vmul.f32 %v2279_v15, %v1938_v9 }
 0x84c   : > { %v1738_v27 = vpack.i.bf16 %v1221_v51, %v1220_v39  ;;  %v1226_v28 = vmul.f32 %v2277_v12, %v1948_v14  ;;  %v1227_v52 = vmul.f32 %v2279_v15, %v1955_v16  ;;  %v1212_v2 = vmul.f32 %v2279_v15, %v1871_v44 }
 0x84d   : > { %1724 = vrot.lane.b32.xlu1 %v1723_v33, %s1771_s19  ;;  %v1743_v61 = vpack.i.bf16 %v1224_v36, %v1223_v56  ;;  %v1209_v6 = vmul.f32 %v2279_v15, %v1855_v37  ;;  %v1219_v9 = vmul.f32 %v2277_v12, %v1890_v50  ;;  %v1222_v44 = vmul.f32 %v2277_v12, %v1914_v60 }
 0x84e   : > { %v1748_v35 = vpack.i.bf16 %v1227_v52, %v1226_v28  ;;  %v1225_v37 = vmul.f32 %v2277_v12, %v1932_v5  ;;  %v1228_v14 = vmul.f32 %v2277_v12, %v1946_v13  ;;  %v1205_v45 = vmul.f32 %v2279_v15, %v1972_v23 }
 0x84f   : > { %1719 = vrot.lane.b32.xlu0 %v1718_v46, %s1778_s7  ;;  %v1204_v53 = vmul.f32 %v2277_v12, %v1987_v3  ;;  %v1203_v62 = vmul.f32 %v2279_v15, %v1970_v22 }
 0x851   : > { %1260 = vrot.lane.b32.xlu1 %v1212_v2, %s1771_s19 }
 0x853   : > { %1246 = vrot.lane.b32.xlu0 %v1209_v6, %s1778_s7 }
 0x855   : > { %1734 = vrot.lane.b32.xlu1 %v1733_v41, %s1779_s8 }
 0x857   : > { %1729 = vrot.lane.b32.xlu0 %v1728_v30, %s1777_s6 }
 0x859   : > { %1739 = vrot.lane.b32.xlu1 %v1738_v27, %s1780_s9 }
 0x85b   : > { %1288 = vrot.lane.b32.xlu0 %v1219_v9, %s1779_s8 }
 0x85d   : > { %1744 = vrot.lane.b32.xlu1 %v1743_v61, %s1781_s10 }
 0x85f   : > { %1302 = vrot.lane.b32.xlu0 %v1222_v44, %s1780_s9 }
 0x861   : > { %1749 = vrot.lane.b32.xlu1 %v1748_v35, %s1782_s11 }
 0x863   : > { %1316 = vrot.lane.b32.xlu0 %v1225_v37, %s1781_s10 }
 0x867   : > { %1330 = vrot.lane.b32.xlu0 %v1228_v14, %s1782_s11 }
 0x8bb   : > { %v1233_v50 = vpop.permute.xlu1 %1232 }
 0x8bd   : > { %v1715_v16 = vpop.permute.xlu0 %1714 }
 0x8be   : > { %v1717_v60 = vunpack.i.h.bf16 %v1715_v16  ;;  %v1716_v29 = vunpack.i.l.bf16 %v1715_v16 }
 0x8bf   : > { %v1725_v25 = vpop.permute.xlu1 %1724 }
 0x8c0   : > { %v1339_v32 = vpack.c.bf16 %v1717_v60, %v1205_v45  ;;  %v1727_v40 = vunpack.i.h.bf16 %v1725_v25  ;;  %v1239_v24 = vsel %vm264_vm1, %v1716_v29, %v1717_v60  ;;  %v1238_v20 = vsel %vm264_vm1, %v1233_v50, %v1716_v29 }
 0x8c1   : > { %v1720_v58 = vpop.permute.xlu0 %1719  ;;  %v1338_v55 = vpack.c.bf16 %v1239_v24, %v1204_v53  ;;  %v1726_v11 = vunpack.i.l.bf16 %v1725_v25  ;;  %v1337_v12 = vpack.c.bf16 %v1238_v20, %v1203_v62 }
 0x8c2   : > { %v1722_v48 = vunpack.i.h.bf16 %v1720_v58  ;;  %1371 = vrot.lane.b32.xlu0 %v1339_v32, %s1776_s5  ;;  %v1721_v7 = vunpack.i.l.bf16 %v1720_v58 }
 0x8c3   : > { %v1261_v5 = vpop.permute.xlu1 %1260  ;;  %v1267_v18 = vsel %vm220_vm2, %v1726_v11, %v1727_v40 }
 0x8c4   : > { %v1342_v26 = vpack.c.bf16 %v1727_v40, %v1722_v48  ;;  %v1253_v21 = vsel %vm393_vm9, %v1721_v7, %v1722_v48  ;;  %v1266_v33 = vsel %vm220_vm2, %v1261_v5, %v1726_v11 }
 0x8c5   : > { %v1247_v47 = vpop.permute.xlu0 %1246  ;;  %v1341_v38 = vpack.c.bf16 %v1267_v18, %v1253_v21 }
 0x8c6   : > { %1377 = vrot.lane.b32.xlu1 %v1342_v26, %s1776_s5  ;;  %v1252_v49 = vsel %vm393_vm9, %v1247_v47, %v1721_v7 }
 0x8c7   : > { %v1735_v13 = vpop.permute.xlu1 %1734  ;;  %v1340_v43 = vpack.c.bf16 %v1266_v33, %v1252_v49 }
 0x8c8   : > { %v1736_v0 = vunpack.i.l.bf16 %v1735_v13  ;;  %v1737_v22 = vunpack.i.h.bf16 %v1735_v13 }
 0x8c9   : > { %v1730_v54 = vpop.permute.xlu0 %1729 }
 0x8ca   : > { %v1731_v31 = vunpack.i.l.bf16 %v1730_v54  ;;  %v1732_v19 = vunpack.i.h.bf16 %v1730_v54  ;;  %v1290_v59 = vsel %vm432_vm10, %v1736_v0, %v1737_v22 }
 0x8cb   : > { %v1740_v4 = vpop.permute.xlu1 %1739 }
 0x8cc   : > { %v1343_v23 = vpack.c.bf16 %v1736_v0, %v1731_v31  ;;  %v1741_v63 = vunpack.i.l.bf16 %v1740_v4  ;;  %v1277_v46 = vsel %vm198_vm8, %v1731_v31, %v1732_v19  ;;  %v1742_v30 = vunpack.i.h.bf16 %v1740_v4 }
 0x8cd   : > { %v1289_v57 = vpop.permute.xlu0 %1288  ;;  %v1344_v51 = vpack.c.bf16 %v1290_v59, %v1277_v46 }
 0x8ce   : > { %1379 = vrot.lane.b32.xlu1 %v1343_v23, %s1776_s5  ;;  %v1291_v41 = vsel %vm432_vm10, %v1737_v22, %v1289_v57  ;;  %v1304_v35 = vsel %vm447_vm11, %v1741_v63, %v1742_v30 }
 0x8cf   : > { %v1745_v8 = vpop.permute.xlu1 %1744  ;;  %v1345_v36 = vpack.c.bf16 %v1291_v41, %v1732_v19 }
 0x8d0   : > { %v1746_v10 = vunpack.i.l.bf16 %v1745_v8  ;;  %v1747_v39 = vunpack.i.h.bf16 %v1745_v8 }
 0x8d1   : > { %v1303_v1 = vpop.permute.xlu0 %1302 }
 0x8d2   : > { %v1346_v17 = vpack.c.bf16 %v1746_v10, %v1741_v63  ;;  %1369 = vrot.lane.b32.xlu1 %v1338_v55, %s1776_s5  ;;  %v1318_v28 = vsel %vm462_vm12, %v1746_v10, %v1747_v39  ;;  %v1305_v52 = vsel %vm447_vm11, %v1742_v30, %v1303_v1  ;;  %v1564_v10 = vld [vmem:[%s2403_s1 + $0xc] sm:$0xf] }
 0x8d3   : > { %v1750_v3 = vpop.permute.xlu1 %1749  ;;  %v1347_v9 = vpack.c.bf16 %v1318_v28, %v1304_v35 }
 0x8d4   : > { %v1751_v34 = vunpack.i.l.bf16 %v1750_v3  ;;  %1385 = vrot.lane.b32.xlu0 %v1346_v17, %s1776_s5  ;;  %v1752_v61 = vunpack.i.h.bf16 %v1750_v3 }
 0x8d5   : > { %v1317_v42 = vpop.permute.xlu0 %1316 }
 0x8d6   : > { %1367 = vrot.lane.b32.xlu1 %v1337_v12, %s1776_s5  ;;  %v1349_v15 = vpack.c.bf16 %v1751_v34, %v1751_v34  ;;  %v1319_v56 = vsel %vm462_vm12, %v1747_v39, %v1317_v42  ;;  %v1332_v44 = vsel %vm477_vm13, %v1751_v34, %v1752_v61 }
 0x8d7   : > { %v1348_v2 = vpack.c.bf16 %v1319_v56, %v1305_v52  ;;  %v1350_v14 = vpack.c.bf16 %v1332_v44, %v1332_v44 }
 0x8d8   : > { %1375 = vrot.lane.b32.xlu0 %v1341_v38, %s1776_s5 }
 0x8d9   : > { %v1331_v27 = vpop.permute.xlu0 %1330 }
 0x8da   : > { %1391 = vrot.lane.b32.xlu1 %v1349_v15, %s1776_s5  ;;  %v1333_v6 = vsel %vm477_vm13, %v1752_v61, %v1331_v27 }
 0x8db   : > { %v1351_v37 = vpack.c.bf16 %v1333_v6, %v1333_v6 }
 0x8dc   : > { %1373 = vrot.lane.b32.xlu0 %v1340_v43, %s1776_s5 }
 0x8de   : > { %1381 = vrot.lane.b32.xlu1 %v1344_v51, %s1776_s5 }
 0x8e0   : > { %1383 = vrot.lane.b32.xlu0 %v1345_v36, %s1776_s5 }
 0x8e2   : > { %1389 = vrot.lane.b32.xlu1 %v1348_v2, %s1776_s5 }
 0x8e4   : > { %1387 = vrot.lane.b32.xlu0 %v1347_v9, %s1776_s5 }
 0x8e6   : > { %1395 = vrot.lane.b32.xlu1 %v1351_v37, %s1776_s5 }
 0x8e8   : > { %1393 = vrot.lane.b32.xlu0 %v1350_v14, %s1776_s5 }
 0x934   : > { %v1372_v45 = vpop.permute.xlu0 %1371 }
 0x938   : > { %v1378_v50 = vpop.permute.xlu1 %1377 }
 0x940   : > { %v1380_v16 = vpop.permute.xlu1 %1379 }
 0x944   : > { %v1370_v60 = vpop.permute.xlu1 %1369 }
 0x945   : > { %v1398_v25 = vsel %vm362_vm7, %v1370_v60, %v1372_v45 }
 0x946   : > { %v1386_v32 = vpop.permute.xlu0 %1385  ;;  %1424 = vmatprep.subr.bf16.mxu1 %v1398_v25 }
 0x948   : > { %v1368_v58 = vpop.permute.xlu1 %1367 }
 0x949   : > { %v1397_v40 = vsel %vm362_vm7, %v1368_v58, %v1370_v60 }
 0x94a   : > { %v1376_v48 = vpop.permute.xlu0 %1375  ;;  %1425 = vmatpush1.bf16.msra.mxu1 %v1397_v40 }
 0x94b   : > { %v1400_v5 = vsel %vm362_vm7, %v1376_v48, %v1378_v50 }
 0x94c   : > { %1426 = vmatprep.subr.bf16.mxu1 %v1400_v5  ;;  %v1392_v26 = vpop.permute.xlu1 %1391 }
 0x94e   : > { %v1374_v47 = vpop.permute.xlu0 %1373 }
 0x94f   : > { %v1399_v13 = vsel %vm362_vm7, %v1374_v47, %v1376_v48 }
 0x950   : > { %1427 = vmatpush1.bf16.msra.mxu1 %v1399_v13  ;;  %v1382_v29 = vpop.permute.xlu1 %1381 }
 0x951   : > { %v1401_v31 = vsel %vm362_vm7, %v1380_v16, %v1382_v29 }
 0x952   : > { %v1384_v54 = vpop.permute.xlu0 %1383 }
 0x953   : > { %v1402_v0 = vsel %vm362_vm7, %v1382_v29, %v1384_v54 }
 0x954   : > { %1428 = vmatprep.subr.bf16.mxu1 %v1402_v0  ;;  %v1390_v4 = vpop.permute.xlu1 %1389 }
 0x955   : > { %1429 = vmatpush1.bf16.msra.mxu1 %v1401_v31 }
 0x956   : > { %v1388_v23 = vpop.permute.xlu0 %1387 }
 0x957   : > { %v1403_v24 = vsel %vm362_vm7, %v1386_v32, %v1388_v23  ;;  %v1404_v57 = vsel %vm362_vm7, %v1388_v23, %v1390_v4 }
 0x958   : > { %1430 = vmatprep.subr.bf16.mxu1 %v1404_v57  ;;  %v1396_v53 = vpop.permute.xlu1 %1395 }
 0x959   : > { %1431 = vmatpush1.bf16.msra.mxu1 %v1403_v24 }
 0x95a   : > { %v1394_v7 = vpop.permute.xlu0 %1393 }
 0x95b   : > { %v1405_v8 = vsel %vm362_vm7, %v1392_v26, %v1394_v7  ;;  %v1406_v55 = vsel %vm362_vm7, %v1394_v7, %v1396_v53 }
 0x95c   : > { %v1419_v63 = vsel %vm180_vm0, %v1405_v8, 0  ;;  %1565 = vmatprep.subr.msk.bf16.mxu1 %vm180_vm0, %v1406_v55 }
 0x95d   : > { %1433 = vmatpush1.bf16.msra.mxu1 %v1419_v63 }
 0x960   : > { %1566 = vmatmul.mubr.msk.bf16.vlgmr.msra.gmra.mrb[4].mxu1 %vm562_vm14, %v1564_v10 }
 0xa33   : > { %v1458_v20 = vpop.f32.mrb[4].mxu1 }
 0xa34   : > { %v1469_v11 = vmul.f32 %v1458_v20, %v1458_v20  ;;  %v1460_v62 = vpop.f32.mrb[5].mxu1 }
 0xa35   : > { %v1465_v17 = vadd.f32 %v1460_v62, %v1458_v20  ;;  %v1470_v1 = vmul.f32 %v1460_v62, %v1460_v62  ;;  %v1462_v21 = vpop.f32.mrb[6].mxu1 }
 0xa36   : > { %v1463_v3 = vpop.f32.mrb[7].mxu1 }
 0xa37   : > { %1466 = vadd.xlane.f32.xlu0 %v1465_v17  ;;  %v1471_v12 = vadd.f32 %v1470_v1, %v1469_v11 }
 0xa39   : > { %1472 = vadd.xlane.f32.xlu1 %v1471_v12 }
 0xac4   : > { %v1467_v34 = vpop.xlane.xlu0 %1466 }
 0xac5   : > { %v1468_v18 = vmul.f32 0.00390625, %v1467_v34 }
 0xac6   : > { %v1473_v19 = vpop.xlane.xlu1 %1472 }
 0xac7   : > { %v1474_v38 = vmul.f32 0.00390625, %v1473_v19  ;;  %v1475_v49 = vmul.f32 %v1468_v18, %v1468_v18  ;;  %v1477_v42 = vsub.f32 %v1458_v20, %v1468_v18  ;;  %v1478_v33 = vsub.f32 %v1460_v62, %v1468_v18 }
 0xac9   : > { %v1476_v22 = vsub.f32 %v1474_v38, %v1475_v49 }
 0xacb   : > { %v1479_v15 = vadd.f32 1e-05, %v1476_v22 }
 0xacd   : > { %1760 = vrsqrt.f32 %v1479_v15 }
 0xad7   : > { %v1761_v46 = vpop.eup %1760 }
 0xad8   : > { %v1481_v43 = vmul.f32 %v1761_v46, %v1477_v42  ;;  %v1482_v59 = vmul.f32 %v1761_v46, %v1478_v33 }
 0xada   : > { %v1483_v41 = vmax.f32 %v1481_v43, 0.0  ;;  %v1484_v39 = vmax.f32 %v1482_v59, 0.0 }
 0xadc   : > { %v1487_v51 = vcombine.low %v1483_v41, %v1484_v39 }
 0xade   : > { %1489 = vst [vmem:[%s170_s25] sm:$0xff] %v1487_v51 }
 0xadf PF: > { %s13_s12 = sadd.s32 1, %s1768_s12  }
 0xae0   : > { %p10_p4 = scmp.ge.s32.totalorder %s13_s12, 4  }
 0xae2   :  { %12 = sbr.rel (!%p10_p4) target bundleno = 1 (0x1), region = 65 }

</bundles_post_ra>
